<compile_context>
chip_gen: v7x
topology: tpu7x:2x2x1
jax: 0.10.0
libtpu: 0.0.40
codegen_flags: <defaults>
</compile_context>

<pallas_src>
import functools

import jax
import jax.numpy as jnp
from jax.experimental import pallas as pl
from jax.experimental.pallas import tpu as pltpu

N_ATOMS = 51
Vmax = 10
Vmin = -10
DELTA_Z = (Vmax - Vmin) / (N_ATOMS - 1)

_LANE = 128
_SUBLANE = 8


def _round_up(x, m):
    return (x + m - 1) // m * m


def _pick_nb(batch, rows_per_image, max_rows=512):
    """Images per conv grid step: a divisor of batch, >= 2 grid steps whenever
    batch > 1 (so v7x's second TensorCore is used), and a bounded row count."""
    best = 1
    for nb in range(1, batch + 1):
        if batch % nb:
            continue
        if batch // nb < 2 and batch > 1:
            continue
        if nb * rows_per_image <= max_rows:
            best = nb
    return best


def _row_tiles(m, tm_max=256, align=_SUBLANE):
    """Row tile + padded M for the fc head: minimal padding, sublane aligned,
    >= 2 grid steps when there is enough work (v7x TensorCore sharding)."""
    if m <= align:
        t = _round_up(max(m, 1), align)
        return t, t
    n_tiles = max(2, -(-m // tm_max))
    t = _round_up(-(-m // n_tiles), align)
    return t, _round_up(m, t)


# ----------------------------------------------------------------------------
# Conv layer kernel: in-VMEM im2col + one MXU matmul + bias + ReLU.
# The stride has already been folded away by a space-to-depth layout, so the
# kernel window is taps x taps with unit stride.
# ----------------------------------------------------------------------------
def _conv_im2col_kernel(x_ref, w_ref, b_ref, o_ref, *, taps, oh, ow,
                        cin_true, cin_block):
    # x_ref: (nb, oh+taps-1, ow+taps-1, Cin)  uint8 (conv1) or bf16
    # w_ref: (taps*taps*true_cin_total, OCp)  bf16, OCp lane-padded
    # b_ref: (1, OCp) f32     o_ref: (nb, oh, ow, OCp) bf16
    x = x_ref[...]
    if x.dtype == jnp.uint8:
        # exact for 0..255; the /256 input scale is folded into w at prep time
        x = x.astype(jnp.int32).astype(jnp.float32)
    x = x.astype(jnp.bfloat16)
    nb = x.shape[0]

    # Drop the previous layer's lane-padding channels (kept only so that its
    # output stores were lane-dense).
    if cin_true != cin_block:
        nblk = x.shape[-1] // cin_block
        x = jnp.concatenate(
            [x[..., k * cin_block:k * cin_block + cin_true] for k in range(nblk)],
            axis=-1)

    # In-VMEM im2col: the duplicated patch matrix never touches HBM.
    cols = []
    for i in range(taps):
        for j in range(taps):
            cols.append(x[:, i:i + oh, j:j + ow, :])
    patches = jnp.concatenate(cols, axis=-1)
    patches = patches.reshape(nb * oh * ow, patches.shape[-1])

    acc = jnp.dot(patches, w_ref[...], preferred_element_type=jnp.float32)
    acc = jnp.maximum(acc + b_ref[...], 0.0)
    o_ref[...] = acc.reshape(nb, oh, ow, -1).astype(o_ref.dtype)


def conv_relu_pallas(x, w, b, *, taps, oh, ow, cin_true, cin_block):
    batch = x.shape[0]
    ocp = w.shape[1]
    nb = _pick_nb(batch, oh * ow)
    grid = batch // nb
    flops = 2 * batch * oh * ow * w.shape[0] * ocp
    bytes_accessed = int(x.size) * x.dtype.itemsize + int(w.size) * 2 \
        + ocp * 4 + batch * oh * ow * ocp * 2

    return pl.pallas_call(
        functools.partial(_conv_im2col_kernel, taps=taps, oh=oh, ow=ow,
                          cin_true=cin_true, cin_block=cin_block),
        out_shape=jax.ShapeDtypeStruct((batch, oh, ow, ocp), jnp.bfloat16),
        grid=(grid,),
        in_specs=[
            pl.BlockSpec((nb,) + x.shape[1:], lambda i: (i, 0, 0, 0)),
            pl.BlockSpec(w.shape, lambda i: (0, 0)),      # invariant weights
            pl.BlockSpec((1, ocp), lambda i: (0, 0)),     # invariant bias
        ],
        out_specs=pl.BlockSpec((nb, oh, ow, ocp), lambda i: (i, 0, 0, 0)),
        compiler_params=pltpu.CompilerParams(
            dimension_semantics=("parallel",)),
        cost_estimate=pl.CostEstimate(flops=flops, transcendentals=0,
                                      bytes_accessed=bytes_accessed),
    )(x, w, b)


# ----------------------------------------------------------------------------
# Fused FC head: relu(x @ w1 + b1) @ w2 + b2 in one kernel.  The (tm, 512)
# hidden activation never leaves VMEM; fc2 output is lane-padded.
# ----------------------------------------------------------------------------
def _fc_head_kernel(x_ref, w1_ref, b1_ref, w2_ref, b2_ref, o_ref):
    x = x_ref[...]
    if x.dtype != jnp.bfloat16:
        x = x.astype(jnp.bfloat16)
    h = jnp.dot(x, w1_ref[...], preferred_element_type=jnp.float32)
    h = jnp.maximum(h + b1_ref[...], 0.0)
    o = jnp.dot(h.astype(jnp.bfloat16), w2_ref[...],
                preferred_element_type=jnp.float32)
    o_ref[...] = o + b2_ref[...]


def fc_head_pallas(x, w1, b1, w2, b2, *, tm_max=256):
    m, k = x.shape
    k1, hdim = w1.shape
    hdim2, n2 = w2.shape
    assert k == k1 and hdim == hdim2 and n2 % _LANE == 0

    tm, m_pad = _row_tiles(m, tm_max)
    if m_pad != m:
        x = jnp.pad(x, ((0, m_pad - m), (0, 0)))
    grid = m_pad // tm
    flops = 2 * m_pad * k * hdim + 2 * m_pad * hdim * n2
    bytes_accessed = m_pad * k * x.dtype.itemsize + int(w1.size) * 2 \
        + int(w2.size) * 2 + (hdim + n2) * 4 + m_pad * n2 * 4

    # TODO(synk): single-buffer the invariant w1/b1/w2/b2 blocks
    # (pipeline_mode=pl.Buffered(1)) to free ~3 MiB of VMEM headroom on v7x.
    out = pl.pallas_call(
        _fc_head_kernel,
        out_shape=jax.ShapeDtypeStruct((m_pad, n2), jnp.float32),
        grid=(grid,),
        in_specs=[
            pl.BlockSpec((tm, k), lambda i: (i, 0)),
            pl.BlockSpec((k, hdim), lambda i: (0, 0)),
            pl.BlockSpec((1, hdim), lambda i: (0, 0)),
            pl.BlockSpec((hdim, n2), lambda i: (0, 0)),
            pl.BlockSpec((1, n2), lambda i: (0, 0)),
        ],
        out_specs=pl.BlockSpec((tm, n2), lambda i: (i, 0)),
        compiler_params=pltpu.CompilerParams(
            dimension_semantics=("parallel",),
            # Raise v5e's 16 MiB default scoped-VMEM limit; well under v7x's
            # 64 MiB physical VMEM.
            vmem_limit_bytes=32 * 1024 * 1024),
        cost_estimate=pl.CostEstimate(flops=flops, transcendentals=0,
                                      bytes_accessed=bytes_accessed),
    )(x, w1, b1, w2, b2)
    return out[:m] if m_pad != m else out


# ----------------------------------------------------------------------------
# Geometry / layout plumbing (XLA-side permutations only, no duplication).
# ----------------------------------------------------------------------------
def _conv_geometry(h, w):
    h1, w1 = (h - 8) // 4 + 1, (w - 8) // 4 + 1
    h2, w2 = (h1 - 4) // 2 + 1, (w1 - 4) // 2 + 1
    h3, w3 = (h2 - 3) // 1 + 1, (w2 - 3) // 1 + 1
    return (h1, w1), (h2, w2), (h3, w3)


def _space_to_depth(x, stride, oh, ow, taps):
    """(B,H,W,C) -> (B, oh+taps-1, ow+taps-1, stride*stride*C); crops to the
    extent the conv actually reads.  Pure permutation (no duplication)."""
    if stride == 1:
        return x
    b, c = x.shape[0], x.shape[-1]
    he, we = (oh + taps - 1) * stride, (ow + taps - 1) * stride
    x = x[:, :he, :we, :]
    x = x.reshape(b, he // stride, stride, we // stride, stride, c)
    x = jnp.transpose(x, (0, 1, 3, 2, 4, 5))
    return x.reshape(b, he // stride, we // stride, stride * stride * c)


# ----------------------------------------------------------------------------
# Parameter preparation (one-time): PyTorch layout -> kernel-ready layout.
# ----------------------------------------------------------------------------
def _strided_conv_weight(w_oihw, stride, oc_pad, scale=1.0):
    """PyTorch (OC,IC,KH,KW) -> (taps*taps*stride*stride*IC, OC_pad) bf16 with
    row order (tap_i, tap_j, phase_i, phase_j, ic), matching the in-kernel
    im2col over the space-to-depth input layout.  Zero-padded OC columns."""
    oc, ic, kh, kw = w_oihw.shape
    assert kh % stride == 0 and kw % stride == 0
    th, tw = kh // stride, kw // stride
    wm = w_oihw.reshape(oc, ic, th, stride, tw, stride)
    wm = jnp.transpose(wm, (2, 4, 3, 5, 1, 0))          # (ti, tj, pi, pj, ic, oc)
    wm = wm.reshape(th * tw * stride * stride * ic, oc) * scale
    if oc_pad != oc:
        wm = jnp.pad(wm, ((0, 0), (0, oc_pad - oc)))
    return wm.astype(jnp.bfloat16)


def _pad_bias(b, oc_pad):
    b = b.astype(jnp.float32)
    if oc_pad != b.shape[0]:
        b = jnp.pad(b, (0, oc_pad - b.shape[0]))
    return b.reshape(1, oc_pad)


def prepare_params(raw, input_shape, n_actions):
    c, h, w = input_shape
    (_, _), (_, _), (h3, w3) = _conv_geometry(h, w)
    conv_out = 64 * h3 * w3
    n_out = n_actions * N_ATOMS
    n_pad = _round_up(n_out, _LANE)

    # fc1 columns: NCHW-flatten order -> NHWC-flatten order (removes the
    # runtime transpose before the flatten).
    fc1_w = raw["fc1_w"].reshape(512, 64, h3, w3)
    fc1_w = jnp.transpose(fc1_w, (0, 2, 3, 1)).reshape(512, conv_out)

    # TODO(synk): optional int8 MXU path for conv1 on v5e/v6e (not v7x: fp8-only MXU).
    return {
        "conv1_w": _strided_conv_weight(raw["conv1_w"], 4, 128, scale=1.0 / 256.0),
        "conv1_b": _pad_bias(raw["conv1_b"], 128),
        "conv2_w": _strided_conv_weight(raw["conv2_w"], 2, 128),
        "conv2_b": _pad_bias(raw["conv2_b"], 128),
        "conv3_w": _strided_conv_weight(raw["conv3_w"], 1, 64),
        "conv3_b": _pad_bias(raw["conv3_b"], 64),
        "fc1_w": fc1_w.T.astype(jnp.bfloat16),                    # (conv_out, 512)
        "fc1_b": raw["fc1_b"].astype(jnp.float32).reshape(1, 512),
        "fc2_w": jnp.pad(raw["fc2_w"].T,
                         ((0, 0), (0, n_pad - n_out))).astype(jnp.bfloat16),
        "fc2_b": jnp.pad(raw["fc2_b"],
                         (0, n_pad - n_out)).astype(jnp.float32).reshape(1, n_pad),
    }


# ----------------------------------------------------------------------------
# Full DistributionalDQN forward pass.
# ----------------------------------------------------------------------------
def distributional_dqn_forward(x_nchw, params, n_actions):
    batch, c, h, w = x_nchw.shape
    (h1, w1), (h2, w2), (h3, w3) = _conv_geometry(h, w)
    n_out = n_actions * N_ATOMS

    # conv1 input: crop to the used extent and fold the NCHW->NHWC transpose
    # into the stride-4 space-to-depth permutation, staying uint8 (1 byte/elem
    # HBM read; the bf16 cast and /256 fold happen in / before the kernel).
    he, we = 4 * (h1 + 1), 4 * (w1 + 1)
    x = x_nchw[:, :, :he, :we].reshape(batch, c, he // 4, 4, we // 4, 4)
    x = jnp.transpose(x, (0, 2, 4, 3, 5, 1)).reshape(batch, he // 4, we // 4, 16 * c)

    a1 = conv_relu_pallas(x, params["conv1_w"], params["conv1_b"],
                          taps=2, oh=h1, ow=w1, cin_true=16 * c, cin_block=16 * c)
    # TODO(synk): emit a1 directly in conv2's space-to-depth layout inside the
    # conv1 kernel to drop this small XLA permutation of the activation.
    a1 = _space_to_depth(a1, 2, h2, w2, 2)
    a2 = conv_relu_pallas(a1, params["conv2_w"], params["conv2_b"],
                          taps=2, oh=h2, ow=w2, cin_true=32, cin_block=128)
    a3 = conv_relu_pallas(a2, params["conv3_w"], params["conv3_b"],
                          taps=3, oh=h3, ow=w3, cin_true=64, cin_block=128)

    # NHWC flatten; fc1_w columns were permuted at prep time to match.
    flat = a3.reshape(batch, h3 * w3 * 64)
    out = fc_head_pallas(flat, params["fc1_w"], params["fc1_b"],
                         params["fc2_w"], params["fc2_b"])
    return out[:, :n_out].reshape(batch, n_actions, N_ATOMS)


# ----------------------------------------------------------------------------
# Pure-JAX f32 reference (mirrors the PyTorch module) + init.
# ----------------------------------------------------------------------------
def reference_forward(x_nchw, raw, n_actions):
    x = x_nchw.astype(jnp.float32) / 256.0

    def conv(x, wgt, bias, stride):
        y = jax.lax.conv_general_dilated(
            x, wgt, window_strides=(stride, stride), padding="VALID",
            dimension_numbers=("NCHW", "OIHW", "NCHW"))
        return jax.nn.relu(y + bias.reshape(1, -1, 1, 1))

    x = conv(x, raw["conv1_w"], raw["conv1_b"], 4)
    x = conv(x, raw["conv2_w"], raw["conv2_b"], 2)
    x = conv(x, raw["conv3_w"], raw["conv3_b"], 1)
    flat = x.reshape(x.shape[0], -1)
    hid = jax.nn.relu(flat @ raw["fc1_w"].T + raw["fc1_b"])
    out = hid @ raw["fc2_w"].T + raw["fc2_b"]
    return out.reshape(x.shape[0], n_actions, N_ATOMS)


def init_params(key, in_channels, conv_out_size, n_actions):
    ks = jax.random.split(key, 10)

    def w(k, shape, fan_in):
        return (jax.random.normal(k, shape, jnp.float32)
                / jnp.sqrt(fan_in)).astype(jnp.float32)

    return {
        "conv1_w": w(ks[0], (32, in_channels, 8, 8), in_channels * 8 * 8),
        "conv1_b": w(ks[1], (32,), in_channels * 8 * 8),
        "conv2_w": w(ks[2], (64, 32, 4, 4), 32 * 4 * 4),
        "conv2_b": w(ks[3], (64,), 32 * 4 * 4),
        "conv3_w": w(ks[4], (64, 64, 3, 3), 64 * 3 * 3),
        "conv3_b": w(ks[5], (64,), 64 * 3 * 3),
        "fc1_w": w(ks[6], (512, conv_out_size), conv_out_size),
        "fc1_b": w(ks[7], (512,), conv_out_size),
        "fc2_w": w(ks[8], (n_actions * N_ATOMS, 512), 512),
        "fc2_b": w(ks[9], (n_actions * N_ATOMS,), 512),
    }


if __name__ == "__main__":
    # Small shapes consistent with the module's conv arithmetic:
    # 36 -> (36-8)/4+1 = 8 -> (8-4)/2+1 = 3 -> (3-3)/1+1 = 1, conv_out = 64.
    batch, in_channels, H, W = 2, 4, 36, 36
    n_actions = 6

    key = jax.random.PRNGKey(0)
    k_x, k_p = jax.random.split(key)

    # Deterministic synthetic uint8 frames (PyTorch-style NCHW input).
    x = jax.random.randint(k_x, (batch, in_channels, H, W), 0, 256,
                           dtype=jnp.int32).astype(jnp.uint8)

    (_, _), (_, _), (h3, w3) = _conv_geometry(H, W)
    conv_out_size = 64 * h3 * w3
    raw = init_params(k_p, in_channels, conv_out_size, n_actions)
    params = prepare_params(raw, (in_channels, H, W), n_actions)

    fwd = jax.jit(functools.partial(distributional_dqn_forward,
                                    n_actions=n_actions))
    out = jax.block_until_ready(fwd(x, params))

    assert out.shape == (batch, n_actions, N_ATOMS)
    assert out.dtype == jnp.float32

    # Correctness check vs. f32 XLA reference (bf16 operand tolerance).
    ref = jax.block_until_ready(reference_forward(x, raw, n_actions))
    max_ref = float(jnp.max(jnp.abs(ref)))
    max_err = float(jnp.max(jnp.abs(out - ref)))
    assert max_err <= 0.05 + 0.05 * max_ref, (max_err, max_ref)

    print("KERNEL_OK")
</pallas_src>

<mosaic_0001>
module attributes {stable_mosaic.version = 11 : i64} {
  func.func @_conv_im2col_kernel(%arg0: i32, %arg1: memref<1x9x9x64xi8, #tpu.memory_space<vmem>>, %arg2: memref<256x128xbf16, #tpu.memory_space<vmem>>, %arg3: memref<1x128xf32, #tpu.memory_space<vmem>>, %arg4: memref<1x8x8x128xbf16, #tpu.memory_space<vmem>>) attributes {dimension_semantics = [#tpu.dimension_semantics<parallel>], iteration_bounds = array<i64: 2>, scalar_prefetch = 0 : i64, scratch_operands = 0 : i64, tpu.core_type = #tpu.core_type<tc>, window_params = [{transform_indices = @transform_0, window_bounds = array<i64: 1, 9, 9, 64>}, {pipeline_mode = #tpu.pipeline_mode<synchronous>, transform_indices = @transform_1, window_bounds = array<i64: 256, 128>}, {pipeline_mode = #tpu.pipeline_mode<synchronous>, transform_indices = @transform_2, window_bounds = array<i64: 1, 128>}, {transform_indices = @transform_3, window_bounds = array<i64: 1, 8, 8, 128>}]} {
    %c0 = arith.constant 0 : index
    %c0_0 = arith.constant 0 : index
    %c0_1 = arith.constant 0 : index
    %c0_2 = arith.constant 0 : index
    %0 = vector.load %arg1[%c0, %c0_0, %c0_1, %c0_2] : memref<1x9x9x64xi8, #tpu.memory_space<vmem>>, vector<1x9x9x64xi8>
    %1 = arith.extui %0 : vector<1x9x9x64xi8> to vector<1x9x9x64xi32>
    %2 = arith.sitofp %1 : vector<1x9x9x64xi32> to vector<1x9x9x64xf32>
    %3 = arith.truncf %2 : vector<1x9x9x64xf32> to vector<1x9x9x64xbf16>
    %4 = vector.extract_strided_slice %3 {offsets = [0, 0, 0, 0], sizes = [1, 8, 8, 64], strides = [1, 1, 1, 1]} : vector<1x9x9x64xbf16> to vector<1x8x8x64xbf16>
    %5 = vector.extract_strided_slice %3 {offsets = [0, 0, 1, 0], sizes = [1, 8, 8, 64], strides = [1, 1, 1, 1]} : vector<1x9x9x64xbf16> to vector<1x8x8x64xbf16>
    %6 = vector.extract_strided_slice %3 {offsets = [0, 1, 0, 0], sizes = [1, 8, 8, 64], strides = [1, 1, 1, 1]} : vector<1x9x9x64xbf16> to vector<1x8x8x64xbf16>
    %7 = vector.extract_strided_slice %3 {offsets = [0, 1, 1, 0], sizes = [1, 8, 8, 64], strides = [1, 1, 1, 1]} : vector<1x9x9x64xbf16> to vector<1x8x8x64xbf16>
    %8 = tpu.concatenate %4, %5, %6, %7 in 3 : vector<1x8x8x64xbf16>, vector<1x8x8x64xbf16>, vector<1x8x8x64xbf16>, vector<1x8x8x64xbf16> -> vector<1x8x8x256xbf16>
    %9 = vector.shape_cast %8 : vector<1x8x8x256xbf16> to vector<64x256xbf16>
    %c0_3 = arith.constant 0 : index
    %c0_4 = arith.constant 0 : index
    %10 = vector.load %arg2[%c0_3, %c0_4] : memref<256x128xbf16, #tpu.memory_space<vmem>>, vector<256x128xbf16>
    %cst = arith.constant dense<0.000000e+00> : vector<64x128xf32>
    %11 = tpu.matmul %9, %10, %cst {dimension_numbers = #tpu.dot_dimension_numbers<[1], [0], [0], [1], [0, 0, 1, 1], [], []>} : vector<64x256xbf16>, vector<256x128xbf16>, vector<64x128xf32> -> vector<64x128xf32>
    %c0_5 = arith.constant 0 : index
    %c0_6 = arith.constant 0 : index
    %12 = vector.load %arg3[%c0_5, %c0_6] : memref<1x128xf32, #tpu.memory_space<vmem>>, vector<1x128xf32>
    %13 = vector.broadcast %12 : vector<1x128xf32> to vector<64x128xf32>
    %14 = arith.addf %11, %13 : vector<64x128xf32>
    %cst_7 = arith.constant 0.000000e+00 : f32
    %15 = vector.broadcast %cst_7 : f32 to vector<64x128xf32>
    %16 = arith.maximumf %14, %15 : vector<64x128xf32>
    %17 = vector.shape_cast %16 : vector<64x128xf32> to vector<1x8x8x128xf32>
    %18 = arith.truncf %17 : vector<1x8x8x128xf32> to vector<1x8x8x128xbf16>
    %c0_8 = arith.constant 0 : index
    %c0_9 = arith.constant 0 : index
    %c0_10 = arith.constant 0 : index
    %c0_11 = arith.constant 0 : index
    %19 = vector.load %arg4[%c0_8, %c0_9, %c0_10, %c0_11] : memref<1x8x8x128xbf16, #tpu.memory_space<vmem>>, vector<1x8x8x128xbf16>
    tpu.vector_store %arg4[%c0_8, %c0_9, %c0_10, %c0_11], %18 {strides = array<i32>} : memref<1x8x8x128xbf16, #tpu.memory_space<vmem>>, vector<1x8x8x128xbf16>,
    return
  }
  func.func @transform_0(%arg0: i32) -> (i32, i32, i32, i32) {
    %c0_i32 = arith.constant 0 : i32
    %c0_i32_0 = arith.constant 0 : i32
    %c0_i32_1 = arith.constant 0 : i32
    %c0_i32_2 = arith.constant 0 : i32
    return %arg0, %c0_i32, %c0_i32_0, %c0_i32_1 : i32, i32, i32, i32
  }
  func.func @transform_1(%arg0: i32) -> (i32, i32) {
    %c0_i32 = arith.constant 0 : i32
    %c0_i32_0 = arith.constant 0 : i32
    %c0_i32_1 = arith.constant 0 : i32
    return %c0_i32, %c0_i32_0 : i32, i32
  }
  func.func @transform_2(%arg0: i32) -> (i32, i32) {
    %c0_i32 = arith.constant 0 : i32
    %c0_i32_0 = arith.constant 0 : i32
    %c0_i32_1 = arith.constant 0 : i32
    return %c0_i32, %c0_i32_0 : i32, i32
  }
  func.func @transform_3(%arg0: i32) -> (i32, i32, i32, i32) {
    %c0_i32 = arith.constant 0 : i32
    %c0_i32_0 = arith.constant 0 : i32
    %c0_i32_1 = arith.constant 0 : i32
    %c0_i32_2 = arith.constant 0 : i32
    return %arg0, %c0_i32, %c0_i32_0, %c0_i32_1 : i32, i32, i32, i32
  }
}

module attributes {stable_mosaic.version = 11 : i64} {
  func.func @_conv_im2col_kernel(%arg0: i32, %arg1: memref<1x4x4x512xbf16, #tpu.memory_space<vmem>>, %arg2: memref<512x128xbf16, #tpu.memory_space<vmem>>, %arg3: memref<1x128xf32, #tpu.memory_space<vmem>>, %arg4: memref<1x3x3x128xbf16, #tpu.memory_space<vmem>>) attributes {dimension_semantics = [#tpu.dimension_semantics<parallel>], iteration_bounds = array<i64: 2>, scalar_prefetch = 0 : i64, scratch_operands = 0 : i64, tpu.core_type = #tpu.core_type<tc>, window_params = [{transform_indices = @transform_0, window_bounds = array<i64: 1, 4, 4, 512>}, {pipeline_mode = #tpu.pipeline_mode<synchronous>, transform_indices = @transform_1, window_bounds = array<i64: 512, 128>}, {pipeline_mode = #tpu.pipeline_mode<synchronous>, transform_indices = @transform_2, window_bounds = array<i64: 1, 128>}, {transform_indices = @transform_3, window_bounds = array<i64: 1, 3, 3, 128>}]} {
    %c0 = arith.constant 0 : index
    %c0_0 = arith.constant 0 : index
    %c0_1 = arith.constant 0 : index
    %c0_2 = arith.constant 0 : index
    %0 = vector.load %arg1[%c0, %c0_0, %c0_1, %c0_2] : memref<1x4x4x512xbf16, #tpu.memory_space<vmem>>, vector<1x4x4x512xbf16>
    %1 = vector.extract_strided_slice %0 {offsets = [0, 0, 0, 0], sizes = [1, 4, 4, 32], strides = [1, 1, 1, 1]} : vector<1x4x4x512xbf16> to vector<1x4x4x32xbf16>
    %2 = vector.extract_strided_slice %0 {offsets = [0, 0, 0, 128], sizes = [1, 4, 4, 32], strides = [1, 1, 1, 1]} : vector<1x4x4x512xbf16> to vector<1x4x4x32xbf16>
    %3 = vector.extract_strided_slice %0 {offsets = [0, 0, 0, 256], sizes = [1, 4, 4, 32], strides = [1, 1, 1, 1]} : vector<1x4x4x512xbf16> to vector<1x4x4x32xbf16>
    %4 = vector.extract_strided_slice %0 {offsets = [0, 0, 0, 384], sizes = [1, 4, 4, 32], strides = [1, 1, 1, 1]} : vector<1x4x4x512xbf16> to vector<1x4x4x32xbf16>
    %5 = tpu.concatenate %1, %2, %3, %4 in 3 : vector<1x4x4x32xbf16>, vector<1x4x4x32xbf16>, vector<1x4x4x32xbf16>, vector<1x4x4x32xbf16> -> vector<1x4x4x128xbf16>
    %6 = vector.extract_strided_slice %5 {offsets = [0, 0, 0, 0], sizes = [1, 3, 3, 128], strides = [1, 1, 1, 1]} : vector<1x4x4x128xbf16> to vector<1x3x3x128xbf16>
    %7 = vector.extract_strided_slice %5 {offsets = [0, 0, 1, 0], sizes = [1, 3, 3, 128], strides = [1, 1, 1, 1]} : vector<1x4x4x128xbf16> to vector<1x3x3x128xbf16>
    %8 = vector.extract_strided_slice %5 {offsets = [0, 1, 0, 0], sizes = [1, 3, 3, 128], strides = [1, 1, 1, 1]} : vector<1x4x4x128xbf16> to vector<1x3x3x128xbf16>
    %9 = vector.extract_strided_slice %5 {offsets = [0, 1, 1, 0], sizes = [1, 3, 3, 128], strides = [1, 1, 1, 1]} : vector<1x4x4x128xbf16> to vector<1x3x3x128xbf16>
    %10 = tpu.concatenate %6, %7, %8, %9 in 3 : vector<1x3x3x128xbf16>, vector<1x3x3x128xbf16>, vector<1x3x3x128xbf16>, vector<1x3x3x128xbf16> -> vector<1x3x3x512xbf16>
    %11 = vector.shape_cast %10 : vector<1x3x3x512xbf16> to vector<9x512xbf16>
    %c0_3 = arith.constant 0 : index
    %c0_4 = arith.constant 0 : index
    %12 = vector.load %arg2[%c0_3, %c0_4] : memref<512x128xbf16, #tpu.memory_space<vmem>>, vector<512x128xbf16>
    %cst = arith.constant dense<0.000000e+00> : vector<9x128xf32>
    %13 = tpu.matmul %11, %12, %cst {dimension_numbers = #tpu.dot_dimension_numbers<[1], [0], [0], [1], [0, 0, 1, 1], [], []>} : vector<9x512xbf16>, vector<512x128xbf16>, vector<9x128xf32> -> vector<9x128xf32>
    %c0_5 = arith.constant 0 : index
    %c0_6 = arith.constant 0 : index
    %14 = vector.load %arg3[%c0_5, %c0_6] : memref<1x128xf32, #tpu.memory_space<vmem>>, vector<1x128xf32>
    %15 = vector.broadcast %14 : vector<1x128xf32> to vector<9x128xf32>
    %16 = arith.addf %13, %15 : vector<9x128xf32>
    %cst_7 = arith.constant 0.000000e+00 : f32
    %17 = vector.broadcast %cst_7 : f32 to vector<9x128xf32>
    %18 = arith.maximumf %16, %17 : vector<9x128xf32>
    %19 = vector.shape_cast %18 : vector<9x128xf32> to vector<1x3x3x128xf32>
    %20 = arith.truncf %19 : vector<1x3x3x128xf32> to vector<1x3x3x128xbf16>
    %c0_8 = arith.constant 0 : index
    %c0_9 = arith.constant 0 : index
    %c0_10 = arith.constant 0 : index
    %c0_11 = arith.constant 0 : index
    %21 = vector.load %arg4[%c0_8, %c0_9, %c0_10, %c0_11] : memref<1x3x3x128xbf16, #tpu.memory_space<vmem>>, vector<1x3x3x128xbf16>
    tpu.vector_store %arg4[%c0_8, %c0_9, %c0_10, %c0_11], %20 {strides = array<i32>} : memref<1x3x3x128xbf16, #tpu.memory_space<vmem>>, vector<1x3x3x128xbf16>,
    return
  }
  func.func @transform_0(%arg0: i32) -> (i32, i32, i32, i32) {
    %c0_i32 = arith.constant 0 : i32
    %c0_i32_0 = arith.constant 0 : i32
    %c0_i32_1 = arith.constant 0 : i32
    %c0_i32_2 = arith.constant 0 : i32
    return %arg0, %c0_i32, %c0_i32_0, %c0_i32_1 : i32, i32, i32, i32
  }
  func.func @transform_1(%arg0: i32) -> (i32, i32) {
    %c0_i32 = arith.constant 0 : i32
    %c0_i32_0 = arith.constant 0 : i32
    %c0_i32_1 = arith.constant 0 : i32
    return %c0_i32, %c0_i32_0 : i32, i32
  }
  func.func @transform_2(%arg0: i32) -> (i32, i32) {
    %c0_i32 = arith.constant 0 : i32
    %c0_i32_0 = arith.constant 0 : i32
    %c0_i32_1 = arith.constant 0 : i32
    return %c0_i32, %c0_i32_0 : i32, i32
  }
  func.func @transform_3(%arg0: i32) -> (i32, i32, i32, i32) {
    %c0_i32 = arith.constant 0 : i32
    %c0_i32_0 = arith.constant 0 : i32
    %c0_i32_1 = arith.constant 0 : i32
    %c0_i32_2 = arith.constant 0 : i32
    return %arg0, %c0_i32, %c0_i32_0, %c0_i32_1 : i32, i32, i32, i32
  }
}

module attributes {stable_mosaic.version = 11 : i64} {
  func.func @_conv_im2col_kernel(%arg0: i32, %arg1: memref<1x3x3x128xbf16, #tpu.memory_space<vmem>>, %arg2: memref<576x64xbf16, #tpu.memory_space<vmem>>, %arg3: memref<1x64xf32, #tpu.memory_space<vmem>>, %arg4: memref<1x1x1x64xbf16, #tpu.memory_space<vmem>>) attributes {dimension_semantics = [#tpu.dimension_semantics<parallel>], iteration_bounds = array<i64: 2>, scalar_prefetch = 0 : i64, scratch_operands = 0 : i64, tpu.core_type = #tpu.core_type<tc>, window_params = [{transform_indices = @transform_0, window_bounds = array<i64: 1, 3, 3, 128>}, {pipeline_mode = #tpu.pipeline_mode<synchronous>, transform_indices = @transform_1, window_bounds = array<i64: 576, 64>}, {pipeline_mode = #tpu.pipeline_mode<synchronous>, transform_indices = @transform_2, window_bounds = array<i64: 1, 64>}, {transform_indices = @transform_3, window_bounds = array<i64: 1, 1, 1, 64>}]} {
    %c0 = arith.constant 0 : index
    %c0_0 = arith.constant 0 : index
    %c0_1 = arith.constant 0 : index
    %c0_2 = arith.constant 0 : index
    %0 = vector.load %arg1[%c0, %c0_0, %c0_1, %c0_2] : memref<1x3x3x128xbf16, #tpu.memory_space<vmem>>, vector<1x3x3x128xbf16>
    %1 = vector.extract_strided_slice %0 {offsets = [0, 0, 0, 0], sizes = [1, 3, 3, 64], strides = [1, 1, 1, 1]} : vector<1x3x3x128xbf16> to vector<1x3x3x64xbf16>
    %2 = vector.extract_strided_slice %1 {offsets = [0, 0, 0, 0], sizes = [1, 1, 1, 64], strides = [1, 1, 1, 1]} : vector<1x3x3x64xbf16> to vector<1x1x1x64xbf16>
    %3 = vector.extract_strided_slice %1 {offsets = [0, 0, 1, 0], sizes = [1, 1, 1, 64], strides = [1, 1, 1, 1]} : vector<1x3x3x64xbf16> to vector<1x1x1x64xbf16>
    %4 = vector.extract_strided_slice %1 {offsets = [0, 0, 2, 0], sizes = [1, 1, 1, 64], strides = [1, 1, 1, 1]} : vector<1x3x3x64xbf16> to vector<1x1x1x64xbf16>
    %5 = vector.extract_strided_slice %1 {offsets = [0, 1, 0, 0], sizes = [1, 1, 1, 64], strides = [1, 1, 1, 1]} : vector<1x3x3x64xbf16> to vector<1x1x1x64xbf16>
    %6 = vector.extract_strided_slice %1 {offsets = [0, 1, 1, 0], sizes = [1, 1, 1, 64], strides = [1, 1, 1, 1]} : vector<1x3x3x64xbf16> to vector<1x1x1x64xbf16>
    %7 = vector.extract_strided_slice %1 {offsets = [0, 1, 2, 0], sizes = [1, 1, 1, 64], strides = [1, 1, 1, 1]} : vector<1x3x3x64xbf16> to vector<1x1x1x64xbf16>
    %8 = vector.extract_strided_slice %1 {offsets = [0, 2, 0, 0], sizes = [1, 1, 1, 64], strides = [1, 1, 1, 1]} : vector<1x3x3x64xbf16> to vector<1x1x1x64xbf16>
    %9 = vector.extract_strided_slice %1 {offsets = [0, 2, 1, 0], sizes = [1, 1, 1, 64], strides = [1, 1, 1, 1]} : vector<1x3x3x64xbf16> to vector<1x1x1x64xbf16>
    %10 = vector.extract_strided_slice %1 {offsets = [0, 2, 2, 0], sizes = [1, 1, 1, 64], strides = [1, 1, 1, 1]} : vector<1x3x3x64xbf16> to vector<1x1x1x64xbf16>
    %11 = tpu.concatenate %2, %3, %4, %5, %6, %7, %8, %9, %10 in 3 : vector<1x1x1x64xbf16>, vector<1x1x1x64xbf16>, vector<1x1x1x64xbf16>, vector<1x1x1x64xbf16>, vector<1x1x1x64xbf16>, vector<1x1x1x64xbf16>, vector<1x1x1x64xbf16>, vector<1x1x1x64xbf16>, vector<1x1x1x64xbf16> -> vector<1x1x1x576xbf16>
    %12 = vector.shape_cast %11 : vector<1x1x1x576xbf16> to vector<1x576xbf16>
    %c0_3 = arith.constant 0 : index
    %c0_4 = arith.constant 0 : index
    %13 = vector.load %arg2[%c0_3, %c0_4] : memref<576x64xbf16, #tpu.memory_space<vmem>>, vector<576x64xbf16>
    %cst = arith.constant dense<0.000000e+00> : vector<1x64xf32>
    %14 = tpu.matmul %12, %13, %cst {dimension_numbers = #tpu.dot_dimension_numbers<[1], [0], [0], [1], [0, 0, 1, 1], [], []>} : vector<1x576xbf16>, vector<576x64xbf16>, vector<1x64xf32> -> vector<1x64xf32>
    %c0_5 = arith.constant 0 : index
    %c0_6 = arith.constant 0 : index
    %15 = vector.load %arg3[%c0_5, %c0_6] : memref<1x64xf32, #tpu.memory_space<vmem>>, vector<1x64xf32>
    %16 = arith.addf %14, %15 : vector<1x64xf32>
    %cst_7 = arith.constant 0.000000e+00 : f32
    %17 = vector.broadcast %cst_7 : f32 to vector<1x64xf32>
    %18 = arith.maximumf %16, %17 : vector<1x64xf32>
    %19 = vector.shape_cast %18 : vector<1x64xf32> to vector<1x1x1x64xf32>
    %20 = arith.truncf %19 : vector<1x1x1x64xf32> to vector<1x1x1x64xbf16>
    %c0_8 = arith.constant 0 : index
    %c0_9 = arith.constant 0 : index
    %c0_10 = arith.constant 0 : index
    %c0_11 = arith.constant 0 : index
    %21 = vector.load %arg4[%c0_8, %c0_9, %c0_10, %c0_11] : memref<1x1x1x64xbf16, #tpu.memory_space<vmem>>, vector<1x1x1x64xbf16>
    tpu.vector_store %arg4[%c0_8, %c0_9, %c0_10, %c0_11], %20 {strides = array<i32>} : memref<1x1x1x64xbf16, #tpu.memory_space<vmem>>, vector<1x1x1x64xbf16>,
    return
  }
  func.func @transform_0(%arg0: i32) -> (i32, i32, i32, i32) {
    %c0_i32 = arith.constant 0 : i32
    %c0_i32_0 = arith.constant 0 : i32
    %c0_i32_1 = arith.constant 0 : i32
    %c0_i32_2 = arith.constant 0 : i32
    return %arg0, %c0_i32, %c0_i32_0, %c0_i32_1 : i32, i32, i32, i32
  }
  func.func @transform_1(%arg0: i32) -> (i32, i32) {
    %c0_i32 = arith.constant 0 : i32
    %c0_i32_0 = arith.constant 0 : i32
    %c0_i32_1 = arith.constant 0 : i32
    return %c0_i32, %c0_i32_0 : i32, i32
  }
  func.func @transform_2(%arg0: i32) -> (i32, i32) {
    %c0_i32 = arith.constant 0 : i32
    %c0_i32_0 = arith.constant 0 : i32
    %c0_i32_1 = arith.constant 0 : i32
    return %c0_i32, %c0_i32_0 : i32, i32
  }
  func.func @transform_3(%arg0: i32) -> (i32, i32, i32, i32) {
    %c0_i32 = arith.constant 0 : i32
    %c0_i32_0 = arith.constant 0 : i32
    %c0_i32_1 = arith.constant 0 : i32
    %c0_i32_2 = arith.constant 0 : i32
    return %arg0, %c0_i32, %c0_i32_0, %c0_i32_1 : i32, i32, i32, i32
  }
}

module attributes {stable_mosaic.version = 11 : i64} {
  func.func @_fc_head_kernel(%arg0: i32, %arg1: memref<8x64xbf16, #tpu.memory_space<vmem>>, %arg2: memref<64x512xbf16, #tpu.memory_space<vmem>>, %arg3: memref<1x512xf32, #tpu.memory_space<vmem>>, %arg4: memref<512x384xbf16, #tpu.memory_space<vmem>>, %arg5: memref<1x384xf32, #tpu.memory_space<vmem>>, %arg6: memref<8x384xf32, #tpu.memory_space<vmem>>) attributes {dimension_semantics = [#tpu.dimension_semantics<parallel>], iteration_bounds = array<i64: 1>, scalar_prefetch = 0 : i64, scratch_operands = 0 : i64, tpu.core_type = #tpu.core_type<tc>, window_params = [{transform_indices = @transform_0, window_bounds = array<i64: 8, 64>}, {pipeline_mode = #tpu.pipeline_mode<synchronous>, transform_indices = @transform_1, window_bounds = array<i64: 64, 512>}, {pipeline_mode = #tpu.pipeline_mode<synchronous>, transform_indices = @transform_2, window_bounds = array<i64: 1, 512>}, {pipeline_mode = #tpu.pipeline_mode<synchronous>, transform_indices = @transform_3, window_bounds = array<i64: 512, 384>}, {pipeline_mode = #tpu.pipeline_mode<synchronous>, transform_indices = @transform_4, window_bounds = array<i64: 1, 384>}, {transform_indices = @transform_5, window_bounds = array<i64: 8, 384>}]} {
    %c0 = arith.constant 0 : index
    %c0_0 = arith.constant 0 : index
    %0 = vector.load %arg1[%c0, %c0_0] : memref<8x64xbf16, #tpu.memory_space<vmem>>, vector<8x64xbf16>
    %c0_1 = arith.constant 0 : index
    %c0_2 = arith.constant 0 : index
    %1 = vector.load %arg2[%c0_1, %c0_2] : memref<64x512xbf16, #tpu.memory_space<vmem>>, vector<64x512xbf16>
    %cst = arith.constant dense<0.000000e+00> : vector<8x512xf32>
    %2 = tpu.matmul %0, %1, %cst {dimension_numbers = #tpu.dot_dimension_numbers<[1], [0], [0], [1], [0, 0, 1, 1], [], []>} : vector<8x64xbf16>, vector<64x512xbf16>, vector<8x512xf32> -> vector<8x512xf32>
    %c0_3 = arith.constant 0 : index
    %c0_4 = arith.constant 0 : index
    %3 = vector.load %arg3[%c0_3, %c0_4] : memref<1x512xf32, #tpu.memory_space<vmem>>, vector<1x512xf32>
    %4 = vector.broadcast %3 : vector<1x512xf32> to vector<8x512xf32>
    %5 = arith.addf %2, %4 : vector<8x512xf32>
    %cst_5 = arith.constant 0.000000e+00 : f32
    %6 = vector.broadcast %cst_5 : f32 to vector<8x512xf32>
    %7 = arith.maximumf %5, %6 : vector<8x512xf32>
    %8 = arith.truncf %7 : vector<8x512xf32> to vector<8x512xbf16>
    %c0_6 = arith.constant 0 : index
    %c0_7 = arith.constant 0 : index
    %9 = vector.load %arg4[%c0_6, %c0_7] : memref<512x384xbf16, #tpu.memory_space<vmem>>, vector<512x384xbf16>
    %cst_8 = arith.constant dense<0.000000e+00> : vector<8x384xf32>
    %10 = tpu.matmul %8, %9, %cst_8 {dimension_numbers = #tpu.dot_dimension_numbers<[1], [0], [0], [1], [0, 0, 1, 1], [], []>} : vector<8x512xbf16>, vector<512x384xbf16>, vector<8x384xf32> -> vector<8x384xf32>
    %c0_9 = arith.constant 0 : index
    %c0_10 = arith.constant 0 : index
    %11 = vector.load %arg5[%c0_9, %c0_10] : memref<1x384xf32, #tpu.memory_space<vmem>>, vector<1x384xf32>
    %12 = vector.broadcast %11 : vector<1x384xf32> to vector<8x384xf32>
    %13 = arith.addf %10, %12 : vector<8x384xf32>
    %c0_11 = arith.constant 0 : index
    %c0_12 = arith.constant 0 : index
    %14 = vector.load %arg6[%c0_11, %c0_12] : memref<8x384xf32, #tpu.memory_space<vmem>>, vector<8x384xf32>
    tpu.vector_store %arg6[%c0_11, %c0_12], %13 {strides = array<i32>} : memref<8x384xf32, #tpu.memory_space<vmem>>, vector<8x384xf32>,
    return
  }
  func.func @transform_0(%arg0: i32) -> (i32, i32) {
    %c0_i32 = arith.constant 0 : i32
    %c0_i32_0 = arith.constant 0 : i32
    return %arg0, %c0_i32 : i32, i32
  }
  func.func @transform_1(%arg0: i32) -> (i32, i32) {
    %c0_i32 = arith.constant 0 : i32
    %c0_i32_0 = arith.constant 0 : i32
    %c0_i32_1 = arith.constant 0 : i32
    return %c0_i32, %c0_i32_0 : i32, i32
  }
  func.func @transform_2(%arg0: i32) -> (i32, i32) {
    %c0_i32 = arith.constant 0 : i32
    %c0_i32_0 = arith.constant 0 : i32
    %c0_i32_1 = arith.constant 0 : i32
    return %c0_i32, %c0_i32_0 : i32, i32
  }
  func.func @transform_3(%arg0: i32) -> (i32, i32) {
    %c0_i32 = arith.constant 0 : i32
    %c0_i32_0 = arith.constant 0 : i32
    %c0_i32_1 = arith.constant 0 : i32
    return %c0_i32, %c0_i32_0 : i32, i32
  }
  func.func @transform_4(%arg0: i32) -> (i32, i32) {
    %c0_i32 = arith.constant 0 : i32
    %c0_i32_0 = arith.constant 0 : i32
    %c0_i32_1 = arith.constant 0 : i32
    return %c0_i32, %c0_i32_0 : i32, i32
  }
  func.func @transform_5(%arg0: i32) -> (i32, i32) {
    %c0_i32 = arith.constant 0 : i32
    %c0_i32_0 = arith.constant 0 : i32
    return %arg0, %c0_i32 : i32, i32
  }
}

</mosaic_0001>

<bundles_post_ra>
// kernel: distributional_dqn_forward.4
= control target key start
LH: loop header
LB: loop body
LE: loop exit
PB: predicated region body
PF: predicated region fallthrough
CT: control target
= control target key end

     0   :  { %s854_s12 = smov 0   ;;  %s1027_s0 = inlined_call_operand.vmem [shape: u8[2,9,9,64], index: 0, kind: input, shape index: {}]   ;;  %s1028_s1 = inlined_call_operand.vmem [shape: bf16[256,128], index: 1, kind: input, shape index: {}]   ;;  %s1029_s2 = inlined_call_operand.vmem [shape: f32[1,128], index: 2, kind: input, shape index: {}]   ;;  %s1030_s3 = inlined_call_operand.vmem [shape: bf16[2,8,8,128], index: 3, kind: output, shape index: {}]  }
   0x1 LB: > { %s675_s13 = sadd.s32 4294967295, %s831_s12   ;;  %p679_p0 = scmp.ge.s32.totalorder %s831_s12, 1  ;;  %s831_s12 = sphi %s854_s12, %s13_s12  }
   0x2   : > { %p137_p1 = scmp.lt.s32.totalorder %s831_s12, 3 }
   0x4   : > { %p138_p2 = pnand %p679_p0, %p137_p1 }
   0x5   : > { %p161_p3 = scmp.lt.s32.totalorder (!%p138_p2), %s675_s13, 1  ;;  %v809_v0 = vld [vmem:[%s1028_s1 + $0x40] sm:$0xff] (!%p138_p2)   ;;  %v811_v2 = vld [vmem:[%s1028_s1 + $0x48] sm:$0xff] (!%p138_p2)   ;;  %v813_v4 = vld [vmem:[%s1028_s1 + $0x50] sm:$0xff] (!%p138_p2)   ;;  %s833_s11 = smov (!%p138_p2), 64   ;;  %vm334_vm0 = vcmask (!%p138_p2), 523264  }
   0x6   : > { %141 = sbr.rel (%p138_p2) target bundleno = 388 (0x184), region = 32  ;;  %v810_v1 = vld [vmem:[%s1028_s1] sm:$0xff] (!%p138_p2)   ;;  %743 = vmatprep.subr.bf16.mxu0 (!%p138_p2), %v809_v0  ;;  %783 = vmatprep.subr.bf16.mxu1 (!%p138_p2), %v809_v0  ;;  %v812_v3 = vld [vmem:[%s1028_s1 + $0x8] sm:$0xff] (!%p138_p2)   ;;  %v814_v5 = vld [vmem:[%s1028_s1 + $0x10] sm:$0xff] (!%p138_p2)  }
   0x7   : > { %744 = vmatpush3.bf16.msra.mxu0 (!%p138_p2), %v810_v1  ;;  %791 = vmatpush3.bf16.msra.mxu1 (!%p138_p2), %v810_v1  ;;  %v815_v50 = vld [vmem:[%s1028_s1 + $0x58] sm:$0xff] (!%p138_p2)   ;;  %v817_v56 = vld [vmem:[%s1028_s1 + $0x60] sm:$0xff] (!%p138_p2)  }
   0x8   : > { %745 = vmatprep.subr.bf16.mxu0 (!%p138_p2), %v811_v2  ;;  %784 = vmatprep.subr.bf16.mxu1 (!%p138_p2), %v811_v2  ;;  %v816_v55 = vld [vmem:[%s1028_s1 + $0x18] sm:$0xff] (!%p138_p2)   ;;  %v818_v61 = vld [vmem:[%s1028_s1 + $0x20] sm:$0xff] (!%p138_p2)  }
   0xb   : > { %746 = vmatpush3.bf16.msra.mxu0 (!%p138_p2), %v812_v3  ;;  %792 = vmatpush3.bf16.msra.mxu1 (!%p138_p2), %v812_v3 }
   0xc   : > { %747 = vmatprep.subr.bf16.mxu0 (!%p138_p2), %v813_v4  ;;  %785 = vmatprep.subr.bf16.mxu1 (!%p138_p2), %v813_v4 }
   0xd   : > { %s1032_s13 = smov (!%p161_p3, %s675_s13), 1 }
   0xe   : > { %s799_s20 = smul.u32 36, %s1032_s13  ;;  %s719_s28 = sshll.u32 %s1032_s13, 5 }
   0xf   : > { %748 = vmatpush3.bf16.msra.mxu0 %v814_v5  ;;  %793 = vmatpush3.bf16.msra.mxu1 %v814_v5  ;;  %s170_s4 = scalar_lea.vmem %s1030_s3, %s719_s28 }
  0x10   : > { %s883_s27 = scalar_lea.vmem %s1027_s0, %s799_s20  ;;  %749 = vmatprep.subr.bf16.mxu0 %v815_v50  ;;  %786 = vmatprep.subr.bf16.mxu1 %v815_v50 }
  0x11   : > { %v889_v6 = vld [vmem:[%s883_s27 + $0x14] sm:$0x3]  ;;  %v183_v7 = vld [vmem:[%s883_s27 + $0x16] sm:$0x1]  ;;  %v893_v8 = vld [vmem:[%s883_s27 + $0x4] sm:$0x3] }
  0x12   : > { %v200_v9 = vunpack.c.l.u8.bf16 %v889_v6  ;;  %v201_v10 = vunpack.c.l.u8.bf16 %v183_v7  ;;  %v175_v11 = vld [vmem:[%s883_s27 + $0x6] sm:$0x1]  ;;  %v192_v12 = vunpack.c.l.u8.bf16 %v893_v8  ;;  %v899_v13 = vld [vmem:[%s883_s27 + $0x18] sm:$0x3]  ;;  %v185_v14 = vld [vmem:[%s883_s27 + $0x1a] sm:$0x1] }
  0x13   : > { %v193_v15 = vunpack.c.l.u8.bf16 %v175_v11  ;;  %v202_v16 = vunpack.c.l.u8.bf16 %v899_v13  ;;  %v203_v17 = vunpack.c.l.u8.bf16 %v185_v14  ;;  %v904_v18 = vld [vmem:[%s883_s27 + $0x8] sm:$0x3]  ;;  %v177_v19 = vld [vmem:[%s883_s27 + $0xa] sm:$0x1]  ;;  %v908_v20 = vld [vmem:[%s883_s27 + $0x10] sm:$0x3]  ;;  %750 = vmatpush3.bf16.msra.mxu0 %v816_v55  ;;  %794 = vmatpush3.bf16.msra.mxu1 %v816_v55 }
  0x14   : > { %v688_v21 = vcombine.low %v200_v9, %v201_v10  ;;  %v194_v22 = vunpack.c.l.u8.bf16 %v904_v18  ;;  %v195_v23 = vunpack.c.l.u8.bf16 %v177_v19  ;;  %v181_v24 = vld [vmem:[%s883_s27 + $0x12] sm:$0x1]  ;;  %v198_v25 = vunpack.c.l.u8.bf16 %v908_v20  ;;  %v916_v26 = vld [vmem:[%s883_s27] sm:$0x3]  ;;  %v173_v27 = vld [vmem:[%s883_s27 + $0x2] sm:$0x1]  ;;  %751 = vmatprep.subr.bf16.mxu0 %v817_v56  ;;  %787 = vmatprep.subr.bf16.mxu1 %v817_v56 }
  0x15   : > { %v684_v28 = vcombine.low %v192_v12, %v193_v15  ;;  %v689_v29 = vcombine.low %v202_v16, %v203_v17  ;;  %v199_v30 = vunpack.c.l.u8.bf16 %v181_v24  ;;  %v190_v31 = vunpack.c.l.u8.bf16 %v916_v26  ;;  %v927_v36 = vld [vmem:[%s883_s27 + $0x1c] sm:$0x3]  ;;  %v187_v41 = vld [vmem:[%s883_s27 + $0x1e] sm:$0x1]  ;;  %v931_v42 = vld [vmem:[%s883_s27 + $0xc] sm:$0x3] }
  0x16   : > { %v284_v32 = vshrl.u32 %v688_v21, 16  ;;  %v286_v33 = vshll.u32 %v688_v21, 16  ;;  %v685_v34 = vcombine.low %v194_v22, %v195_v23  ;;  %v191_v35 = vunpack.c.l.u8.bf16 %v173_v27  ;;  %v179_v47 = vld [vmem:[%s883_s27 + $0xe] sm:$0x1]  ;;  %v937_v48 = vld [vmem:[%s883_s27 + $0x20] sm:$0x3] }
  0x17   : > { %v256_v37 = vshrl.u32 %v684_v28, 16  ;;  %v258_v38 = vshll.u32 %v684_v28, 16  ;;  %v291_v39 = vshrl.u32 %v689_v29, 16  ;;  %v293_v40 = vshll.u32 %v689_v29, 16  ;;  %v189_v49 = vld [vmem:[%s883_s27 + $0x22] sm:$0x1]  ;;  %752 = vmatpush3.bf16.msra.mxu0 %v818_v61  ;;  %795 = vmatpush3.bf16.msra.mxu1 %v818_v61 }
  0x18   : > { %v288_v43 = vrot.slane %v286_v33, 1  ;;  %v263_v44 = vshrl.u32 %v685_v34, 16  ;;  %v265_v45 = vshll.u32 %v685_v34, 16  ;;  %v687_v46 = vcombine.low %v198_v25, %v199_v30  ;;  %v819_v7 = vld [vmem:[%s1028_s1 + $0x68] sm:$0xff]   ;;  %v821_v29 = vld [vmem:[%s1028_s1 + $0x70] sm:$0xff]  }
  0x19   : > { %v260_v51 = vrot.slane %v258_v38, 1  ;;  %v295_v52 = vrot.slane %v293_v40, 1  ;;  %v683_v53 = vcombine.low %v190_v31, %v191_v35  ;;  %v204_v54 = vunpack.c.l.u8.bf16 %v927_v36  ;;  %v820_v23 = vld [vmem:[%s1028_s1 + $0x28] sm:$0xff]   ;;  %753 = vmatprep.subr.bf16.mxu0 %v819_v7  ;;  %788 = vmatprep.subr.bf16.mxu1 %v819_v7  ;;  %v822_v38 = vld [vmem:[%s1028_s1 + $0x30] sm:$0xff]   ;;  %v823_v40 = vld [vmem:[%s1028_s1 + $0x78] sm:$0xff]  }
  0x1a   : > { %v289_v57 = vor.u32 %v288_v43, %v284_v32  ;;  %v267_v58 = vrot.slane %v265_v45, 1  ;;  %v277_v59 = vshrl.u32 %v687_v46, 16  ;;  %v279_v60 = vshll.u32 %v687_v46, 16  ;;  %v824_v45 = vld [vmem:[%s1028_s1 + $0x38] sm:$0xff]   ;;  %v692_v36 = vld [vmem:[%s1029_s2] ss:$0 sm:$0xff] }
  0x1b   : > { %v261_v62 = vor.u32 %v260_v51, %v256_v37  ;;  %v296_v63 = vor.u32 %v295_v52, %v291_v39  ;;  %v249_v0 = vshrl.u32 %v683_v53, 16  ;;  %v251_v1 = vshll.u32 %v683_v53, 16  ;;  %754 = vmatpush3.bf16.msra.mxu0 %v820_v23  ;;  %796 = vmatpush3.bf16.msra.mxu1 %v820_v23 }
  0x1c   : > { %314 = vrot.lane.b32.xlu1 %v289_v57, %s833_s11  ;;  %v268_v2 = vor.u32 %v267_v58, %v263_v44  ;;  %v281_v3 = vrot.slane %v279_v60, 1  ;;  %v205_v4 = vunpack.c.l.u8.bf16 %v187_v41  ;;  %v196_v5 = vunpack.c.l.u8.bf16 %v931_v42  ;;  %755 = vmatprep.subr.bf16.mxu0 %v821_v29 }
  0x1d   : > { %306 = vrot.lane.b32.xlu0 %v261_v62, %s833_s11  ;;  %v253_v10 = vrot.slane %v251_v1, 1  ;;  %v197_v11 = vunpack.c.l.u8.bf16 %v179_v47  ;;  %v206_v14 = vunpack.c.l.u8.bf16 %v937_v48  ;;  %v207_v15 = vunpack.c.l.u8.bf16 %v189_v49  ;;  %789 = vmatprep.subr.bf16.mxu1 %v821_v29 }
  0x1e   : > { %v690_v17 = vcombine.low %v204_v54, %v205_v4  ;;  %v282_v24 = vor.u32 %v281_v3, %v277_v59 }
  0x1f   : > { %v686_v19 = vcombine.low %v196_v5, %v197_v11  ;;  %v691_v21 = vcombine.low %v206_v14, %v207_v15  ;;  %v254_v30 = vor.u32 %v253_v10, %v249_v0  ;;  %756 = vmatpush3.bf16.msra.mxu0 %v822_v38  ;;  %797 = vmatpush3.bf16.msra.mxu1 %v822_v38 }
  0x20   : > { %316 = vrot.lane.b32.xlu1 %v296_v63, %s833_s11  ;;  %v298_v27 = vshrl.u32 %v690_v17, 16  ;;  %v300_v28 = vshll.u32 %v690_v17, 16  ;;  %757 = vmatprep.subr.bf16.mxu0 %v823_v40 }
  0x21   : > { %308 = vrot.lane.b32.xlu0 %v268_v2, %s833_s11  ;;  %v270_v32 = vshrl.u32 %v686_v19, 16  ;;  %v272_v33 = vshll.u32 %v686_v19, 16  ;;  %v328_v34 = vshll.u32 %v691_v21, 16  ;;  %v326_v43 = vshrl.u32 %v691_v21, 16  ;;  %790 = vmatprep.subr.bf16.mxu1 %v823_v40 }
  0x22   : > { %v302_v35 = vrot.slane %v300_v28, 1 }
  0x23   : > { %v274_v37 = vrot.slane %v272_v33, 1  ;;  %v330_v44 = vrot.slane %v328_v34, 1  ;;  %758 = vmatpush3.bf16.msra.mxu0 %v824_v45  ;;  %798 = vmatpush3.bf16.msra.mxu1 %v824_v45 }
  0x24   : > { %312 = vrot.lane.b32.xlu1 %v282_v24, %s833_s11  ;;  %v303_v39 = vor.u32 %v302_v35, %v298_v27 }
  0x25   : > { %304 = vrot.lane.b32.xlu0 %v254_v30, %s833_s11  ;;  %v275_v41 = vor.u32 %v274_v37, %v270_v32  ;;  %v331_v46 = vor.u32 %v330_v44, %v326_v43 }
  0x28   : > { %318 = vrot.lane.b32.xlu1 %v303_v39, %s833_s11 }
  0x29   : > { %310 = vrot.lane.b32.xlu0 %v275_v41, %s833_s11 }
  0x2d   : > { %332 = vrot.lane.b32.xlu0 %v331_v46, %s833_s11 }
  0x8e   : > { %v315_v47 = vpop.permute.xlu1 %314 }
  0x8f   : > { %v307_v49 = vpop.permute.xlu0 %306  ;;  %v352_v52 = vsel %vm334_vm0, %v200_v9, %v315_v47 }
  0x90   : > { %v340_v56 = vsel %vm334_vm0, %v192_v12, %v307_v49 }
  0x92   : > { %v317_v50 = vpop.permute.xlu1 %316 }
  0x93   : > { %v309_v51 = vpop.permute.xlu0 %308  ;;  %v355_v53 = vsel %vm334_vm0, %v202_v16, %v317_v50 }
  0x94   : > { %v698_v55 = vcombine.low %v352_v52, %v355_v53  ;;  %v343_v57 = vsel %vm334_vm0, %v194_v22, %v309_v51 }
  0x95   : > { %v694_v58 = vcombine.low %v340_v56, %v343_v57 }
  0x96   : > { %579 = vmatprep.mubr.bf16.mxu1 %v698_v55  ;;  %v313_v59 = vpop.permute.xlu1 %312 }
  0x97   : > { %v349_v6 = vsel %vm334_vm0, %v198_v25, %v313_v59  ;;  %563 = vmatprep.mubr.bf16.mxu0 %v694_v58  ;;  %v305_v9 = vpop.permute.xlu0 %304 }
  0x98   : > { %v697_v13 = vcombine.low %v349_v6, %v352_v52  ;;  %v337_v8 = vsel %vm334_vm0, %v190_v31, %v305_v9 }
  0x99   : > { %v693_v16 = vcombine.low %v337_v8, %v340_v56 }
  0x9a   : > { %580 = vmatmul.mubr.bf16.vlgmr.msra.gmra.mrb[0].mxu1 %v697_v13  ;;  %v319_v18 = vpop.permute.xlu1 %318 }
  0x9b   : > { %564 = vmatmul.mubr.bf16.vlgmr.msra.gmra.mrb[0].mxu0 %v693_v16  ;;  %v311_v12 = vpop.permute.xlu0 %310  ;;  %v358_v20 = vsel %vm334_vm0, %v204_v54, %v319_v18 }
  0x9c   : > { %v346_v22 = vsel %vm334_vm0, %v196_v5, %v311_v12  ;;  %v699_v62 = vcombine.low %v355_v53, %v358_v20 }
  0x9d   : > { %v696_v60 = vcombine.low %v346_v22, %v349_v6  ;;  %v695_v31 = vcombine.low %v343_v57, %v346_v22 }
  0x9f   : > { %571 = vmatprep.mubr.bf16.mxu0 %v696_v60  ;;  %v333_v25 = vpop.permute.xlu0 %332 }
  0xa0   : > { %v361_v26 = vsel %vm334_vm0, %v206_v14, %v333_v25 }
  0xa1   : > { %v700_v61 = vcombine.low %v358_v20, %v361_v26 }
  0xa3   : > { %572 = vmatmul.mubr.bf16.gmra.mrb[4].mxu0 %v695_v31  ;;  %587 = vmatprep.mubr.bf16.mxu1 %v700_v61 }
  0xa4   : > { %588 = vmatmul.mubr.bf16.gmra.mrb[4].mxu1 %v699_v62 }
 0x16d   : > { %v771_v42 = vpop.f32.mrb[0].mxu1 }
 0x16e   : > { %v759_v63 = vpop.f32.mrb[0].mxu0  ;;  %v772_v54 = vpop.f32.mrb[1].mxu1 }
 0x16f   : > { %v760_v0 = vpop.f32.mrb[1].mxu0  ;;  %v773_v1 = vadd.f32 %v772_v54, %v771_v42  ;;  %v774_v2 = vpop.f32.mrb[2].mxu1 }
 0x170   : > { %v761_v48 = vadd.f32 %v760_v0, %v759_v63  ;;  %v762_v3 = vpop.f32.mrb[2].mxu0  ;;  %v775_v4 = vpop.f32.mrb[3].mxu1 }
 0x171   : > { %v582_v5 = vadd.f32 %v773_v1, %v692_v36  ;;  %v763_v7 = vpop.f32.mrb[3].mxu0  ;;  %v776_v10 = vadd.f32 %v775_v4, %v774_v2 }
 0x172   : > { %v566_v11 = vadd.f32 %v761_v48, %v692_v36  ;;  %v764_v14 = vadd.f32 %v763_v7, %v762_v3 }
 0x173   : > { %v585_v15 = vadd.f32 %v776_v10, %v692_v36  ;;  %v600_v19 = vmax.f32 %v582_v5, 0.0 }
 0x174   : > { %v569_v17 = vadd.f32 %v764_v14, %v692_v36  ;;  %v596_v23 = vmax.f32 %v566_v11, 0.0 }
 0x175   : > { %v601_v21 = vmax.f32 %v585_v15, 0.0 }
 0x176   : > { %v597_v24 = vmax.f32 %v569_v17, 0.0  ;;  %v765_v27 = vpop.f32.mrb[4].mxu0 }
 0x177   : > { %v733_v28 = vpack.c.bf16 %v601_v21, %v600_v19  ;;  %v766_v29 = vpop.f32.mrb[5].mxu0  ;;  %v777_v30 = vpop.f32.mrb[4].mxu1 }
 0x178   : > { %v723_v32 = vpack.c.bf16 %v597_v24, %v596_v23  ;;  %v767_v33 = vadd.f32 %v766_v29, %v765_v27  ;;  %v768_v34 = vpop.f32.mrb[6].mxu0  ;;  %v778_v35 = vpop.f32.mrb[5].mxu1 }
 0x179   : > { %741 = vst [vmem:[%s170_s4 + $0x10] sm:$0xff] %v733_v28   ;;  %v779_v37 = vadd.f32 %v778_v35, %v777_v30  ;;  %v769_v38 = vpop.f32.mrb[7].mxu0  ;;  %v780_v39 = vpop.f32.mrb[6].mxu1 }
 0x17a   : > { %724 = vst [vmem:[%s170_s4] sm:$0xff] %v723_v32   ;;  %v574_v40 = vadd.f32 %v767_v33, %v692_v36  ;;  %v770_v41 = vadd.f32 %v769_v38, %v768_v34  ;;  %v781_v43 = vpop.f32.mrb[7].mxu1 }
 0x17b   : > { %v590_v44 = vadd.f32 %v779_v37, %v692_v36  ;;  %v782_v45 = vadd.f32 %v781_v43, %v780_v39 }
 0x17c   : > { %v577_v46 = vadd.f32 %v770_v41, %v692_v36  ;;  %v598_v49 = vmax.f32 %v574_v40, 0.0 }
 0x17d   : > { %v593_v47 = vadd.f32 %v782_v45, %v692_v36  ;;  %v602_v51 = vmax.f32 %v590_v44, 0.0 }
 0x17e   : > { %v599_v50 = vmax.f32 %v577_v46, 0.0 }
 0x17f   : > { %v603_v52 = vmax.f32 %v593_v47, 0.0 }
 0x180   : > { %v728_v53 = vpack.c.bf16 %v599_v50, %v598_v49 }
 0x181   : > { %v738_v55 = vpack.c.bf16 %v603_v52, %v602_v51 }
 0x182   : > { %740 = vst [vmem:[%s170_s4 + $0x8] sm:$0xff] %v728_v53  }
 0x183   : > { %742 = vst [vmem:[%s170_s4 + $0x18] sm:$0xff] %v738_v55  }
 0x184 PF: > { %s13_s12 = sadd.s32 1, %s831_s12  }
 0x185   : > { %p10_p4 = scmp.ge.s32.totalorder %s13_s12, 4  }
 0x187   :  { %12 = sbr.rel (!%p10_p4) target bundleno = 1 (0x1), region = 62 }

// kernel: distributional_dqn_forward.5
= control target key start
LH: loop header
LB: loop body
LE: loop exit
PB: predicated region body
PF: predicated region fallthrough
CT: control target
= control target key end

     0   :  { %s1215_s12 = smov 0   ;;  %s1419_s0 = inlined_call_operand.vmem [shape: bf16[2,4,4,512], index: 0, kind: input, shape index: {}]   ;;  %s1420_s1 = inlined_call_operand.vmem [shape: bf16[512,128], index: 1, kind: input, shape index: {}]   ;;  %s1421_s2 = inlined_call_operand.vmem [shape: f32[1,128], index: 2, kind: input, shape index: {}]   ;;  %s1422_s3 = inlined_call_operand.vmem [shape: bf16[2,3,3,128], index: 3, kind: output, shape index: {}]  }
   0x1 LB: > { %s1041_s13 = sadd.s32 4294967295, %s1188_s12   ;;  %p1045_p0 = scmp.ge.s32.totalorder %s1188_s12, 1  ;;  %s1188_s12 = sphi %s1215_s12, %s13_s12  }
   0x2   : > { %p137_p1 = scmp.lt.s32.totalorder %s1188_s12, 3 }
   0x4   : > { %p138_p2 = pnand %p1045_p0, %p137_p1 }
   0x5   : > { %p161_p3 = scmp.lt.s32.totalorder (!%p138_p2), %s1041_s13, 1  ;;  %v183_v0 = vlaneseq (!%p138_p2)  ;;  %v1190_v1 = vmov (!%p138_p2), 1983009808   ;;  %s1191_s18 = smov (!%p138_p2), 64   ;;  %v1150_v19 = vld [vmem:[%s1420_s1 + $0x40] sm:$0xff] (!%p138_p2)   ;;  %v1154_v26 = vld [vmem:[%s1420_s1 + $0x48] sm:$0xff] (!%p138_p2)  }
   0x6   : > { %141 = sbr.rel (%p138_p2) target bundleno = 424 (0x1a8), region = 32  ;;  %v181_v2 = vunpack.c.l.s4 (!%p138_p2), %v1190_v1  ;;  %s1192_s19 = smov (!%p138_p2), 32   ;;  %v1151_v20 = vld [vmem:[%s1420_s1 + $0xc0] sm:$0xff] (!%p138_p2)   ;;  %1088 = vmatprep.subr.bf16.mxu0 (!%p138_p2), %v1150_v19  ;;  %v1155_v27 = vld [vmem:[%s1420_s1 + $0xc8] sm:$0xff] (!%p138_p2)   ;;  %v1158_v34 = vld [vmem:[%s1420_s1 + $0x50] sm:$0xff] (!%p138_p2)   ;;  %vm272_vm0 = vcmask (!%p138_p2), 261120  }
   0x7   : > { %v1225_v3 = vshrl.u32 (!%p138_p2), %v183_v0, 7  ;;  %v1152_v21 = vld [vmem:[%s1420_s1] sm:$0xff] (!%p138_p2)   ;;  %1110 = vmatprep.subr.bf16.mxu1 (!%p138_p2), %v1151_v20  ;;  %v1156_v28 = vld [vmem:[%s1420_s1 + $0x8] sm:$0xff] (!%p138_p2)   ;;  %v1159_v35 = vld [vmem:[%s1420_s1 + $0xd0] sm:$0xff] (!%p138_p2)   ;;  %s1193_s21 = smov (!%p138_p2), 96   ;;  %vm285_vm1 = vcmask (!%p138_p2), 523264  }
   0x8   : > { %v182_v4 = vunpack.c.0.s8 (!%p138_p2), %v181_v2  ;;  %v1153_v22 = vld [vmem:[%s1420_s1 + $0x80] sm:$0xff] (!%p138_p2)   ;;  %1089 = vmatpush3.bf16.msra.mxu0 (!%p138_p2), %v1152_v21  ;;  %v1157_v29 = vld [vmem:[%s1420_s1 + $0x88] sm:$0xff] (!%p138_p2)   ;;  %v1160_v36 = vld [vmem:[%s1420_s1 + $0x10] sm:$0xff] (!%p138_p2)   ;;  %vm294_vm2 = vcmask (!%p138_p2), 785408   ;;  %vm974_vm3 = vcmask (!%p138_p2), 1041408  }
   0x9   : > { %1111 = vmatpush3.bf16.msra.mxu1 (!%p138_p2), %v1153_v22  ;;  %1090 = vmatprep.subr.bf16.mxu0 (!%p138_p2), %v1154_v26  ;;  %v1161_v37 = vld [vmem:[%s1420_s1 + $0x90] sm:$0xff] (!%p138_p2)   ;;  %v1162_v41 = vld [vmem:[%s1420_s1 + $0x58] sm:$0xff] (!%p138_p2)   ;;  %v1166_v46 = vld [vmem:[%s1420_s1 + $0x60] sm:$0xff] (!%p138_p2)   ;;  %vm975_vm4 = vsmask.f32 (!%p138_p2), 1280 }
   0xa   : > { %v185_v5 = vsub.s32 (!%p138_p2), %v182_v4, %v1225_v3  ;;  %1112 = vmatprep.subr.bf16.mxu1 (!%p138_p2), %v1155_v27  ;;  %v1163_v42 = vld [vmem:[%s1420_s1 + $0xd8] sm:$0xff] (!%p138_p2)   ;;  %v1167_v47 = vld [vmem:[%s1420_s1 + $0xe0] sm:$0xff] (!%p138_p2)   ;;  %v1170_v50 = vld [vmem:[%s1420_s1 + $0x68] sm:$0xff] (!%p138_p2)  }
   0xb   : > { %v1164_v43 = vld [vmem:[%s1420_s1 + $0x18] sm:$0xff] (!%p138_p2)   ;;  %v1168_v48 = vld [vmem:[%s1420_s1 + $0x20] sm:$0xff] (!%p138_p2)   ;;  %v1171_v51 = vld [vmem:[%s1420_s1 + $0xe8] sm:$0xff] (!%p138_p2)  }
   0xc   : > { %1091 = vmatpush3.bf16.msra.mxu0 (!%p138_p2), %v1156_v28  ;;  %v1165_v44 = vld [vmem:[%s1420_s1 + $0x98] sm:$0xff] (!%p138_p2)   ;;  %v1169_v49 = vld [vmem:[%s1420_s1 + $0xa0] sm:$0xff] (!%p138_p2)   ;;  %v1172_v52 = vld [vmem:[%s1420_s1 + $0x28] sm:$0xff] (!%p138_p2)  }
   0xd   : > { %s1424_s13 = smov (!%p161_p3, %s1041_s13), 1  ;;  %1113 = vmatpush3.bf16.msra.mxu1 %v1157_v29  ;;  %1092 = vmatprep.subr.bf16.mxu0 %v1158_v34  ;;  %v1173_v53 = vld [vmem:[%s1420_s1 + $0xa8] sm:$0xff]   ;;  %v1174_v54 = vld [vmem:[%s1420_s1 + $0x70] sm:$0xff]   ;;  %v1178_v58 = vld [vmem:[%s1420_s1 + $0x78] sm:$0xff]  }
   0xe   : > { %s1087_s14 = sshll.u32 %s1424_s13, 5  ;;  %1114 = vmatprep.subr.bf16.mxu1 %v1159_v35  ;;  %v1175_v55 = vld [vmem:[%s1420_s1 + $0xf0] sm:$0xff]   ;;  %v1179_v59 = vld [vmem:[%s1420_s1 + $0xf8] sm:$0xff]   ;;  %s1132_s11 = smul.u32 6, %s1424_s13  ;;  %vm976_vm5 = vmand %vm974_vm3, %vm975_vm4 }
   0xf   : > { %s165_s17 = scalar_lea.vmem %s1419_s0, %s1087_s14  ;;  %v1176_v56 = vld [vmem:[%s1420_s1 + $0x30] sm:$0xff]   ;;  %v1180_v60 = vld [vmem:[%s1420_s1 + $0x38] sm:$0xff]  }
  0x10   : > { %v1232_v6 = vld [vmem:[%s165_s17 + $0x8] sm:$0xff]  ;;  %v1234_v7 = vld [vmem:[%s165_s17 + $0x10] sm:$0xff]  ;;  %v1242_v12 = vld [vmem:[%s165_s17] sm:$0xff]  ;;  %1093 = vmatpush3.bf16.msra.mxu0 %v1160_v36  ;;  %s170_s13 = scalar_lea.vmem %s1422_s3, %s1132_s11 }
  0x11   : > { %v228_v8 = vcombine.high %v1232_v6, %v1232_v6  ;;  %v194_v9 = vrot.slane %v1232_v6, %v185_v5  ;;  %v236_v10 = vcombine.high %v1234_v7, %v1234_v7  ;;  %v202_v11 = vrot.slane %v1234_v7, %v185_v5  ;;  %v1261_v23 = vld [vmem:[%s165_s17 + $0x18] sm:$0xff]  ;;  %1115 = vmatpush3.bf16.msra.mxu1 %v1161_v37  ;;  %v1177_v57 = vld [vmem:[%s1420_s1 + $0xb0] sm:$0xff]  }
  0x12   : > { %v220_v15 = vcombine.high %v1242_v12, %v1242_v12  ;;  %v186_v18 = vrot.slane %v1242_v12, %v185_v5  ;;  %v210_v30 = vrot.slane %v1261_v23, %v185_v5  ;;  %v244_v33 = vcombine.high %v1261_v23, %v1261_v23  ;;  %1094 = vmatprep.subr.bf16.mxu0 %v1162_v41  ;;  %v1181_v61 = vld [vmem:[%s1420_s1 + $0xb8] sm:$0xff]  }
  0x13   : > { %v235_v13 = vrot.slane %v228_v8, %v185_v5  ;;  %v195_v14 = vcombine.high %v194_v9, %v194_v9  ;;  %v243_v16 = vrot.slane %v236_v10, %v185_v5  ;;  %v203_v17 = vcombine.high %v202_v11, %v202_v11  ;;  %1116 = vmatprep.subr.bf16.mxu1 %v1163_v42 }
  0x14   : > { %v227_v24 = vrot.slane %v220_v15, %v185_v5  ;;  %v187_v25 = vcombine.high %v186_v18, %v186_v18  ;;  %v211_v39 = vcombine.high %v210_v30, %v210_v30  ;;  %v251_v40 = vrot.slane %v244_v33, %v185_v5  ;;  %1095 = vmatpush3.bf16.msra.mxu0 %v1164_v43 }
  0x15   : > { %254 = vrot.lane.b32.xlu1 %v235_v13, %s1191_s18  ;;  %214 = vrot.lane.b32.xlu0 %v195_v14, %s1192_s19  ;;  %v261_v31 = vcombine.high %v235_v13, %v235_v13  ;;  %v262_v32 = vcombine.high %v243_v16, %v243_v16  ;;  %v1194_v9 = vmov 1966171168  }
  0x16   : > { %v260_v38 = vcombine.high %v227_v24, %v227_v24  ;;  %1117 = vmatpush3.bf16.msra.mxu1 %v1165_v44  ;;  %v263_v45 = vcombine.high %v251_v40, %v251_v40  ;;  %1096 = vmatprep.subr.bf16.mxu0 %v1166_v46  ;;  %v334_v10 = vunpack.c.l.s4 %v1194_v9 }
  0x17   : > { %1118 = vmatprep.subr.bf16.mxu1 %v1167_v47 }
  0x18   : > { %1097 = vmatpush3.bf16.msra.mxu0 %v1168_v48  ;;  %v335_v18 = vunpack.c.0.s8 %v334_v10 }
  0x19   : > { %256 = vrot.lane.b32.xlu1 %v243_v16, %s1191_s18  ;;  %216 = vrot.lane.b32.xlu0 %v203_v17, %s1192_s19 }
  0x1a   : > { %1119 = vmatpush3.bf16.msra.mxu1 %v1169_v49  ;;  %1098 = vmatprep.subr.bf16.mxu0 %v1170_v50  ;;  %v1369_v28 = vsub.s32 %v335_v18, %v1225_v3 }
  0x1b   : > { %1120 = vmatprep.subr.bf16.mxu1 %v1171_v51 }
  0x1c   : > { %1099 = vmatpush3.bf16.msra.mxu0 %v1172_v52 }
  0x1d   : > { %252 = vrot.lane.b32.xlu1 %v227_v24, %s1191_s18  ;;  %212 = vrot.lane.b32.xlu0 %v187_v25, %s1192_s19 }
  0x1e   : > { %1121 = vmatpush3.bf16.msra.mxu1 %v1173_v53  ;;  %1100 = vmatprep.subr.bf16.mxu0 %v1174_v54 }
  0x1f   : > { %1122 = vmatprep.subr.bf16.mxu1 %v1175_v55 }
  0x20   : > { %1101 = vmatpush3.bf16.msra.mxu0 %v1176_v56 }
  0x21   : > { %266 = vrot.lane.b32.xlu1 %v261_v31, %s1193_s21  ;;  %268 = vrot.lane.b32.xlu0 %v262_v32, %s1193_s21 }
  0x22   : > { %1123 = vmatpush3.bf16.msra.mxu1 %v1177_v57  ;;  %1102 = vmatprep.subr.bf16.mxu0 %v1178_v58 }
  0x23   : > { %1124 = vmatprep.subr.bf16.mxu1 %v1179_v59 }
  0x24   : > { %1103 = vmatpush3.bf16.msra.mxu0 %v1180_v60 }
  0x25   : > { %264 = vrot.lane.b32.xlu1 %v260_v38, %s1193_s21  ;;  %218 = vrot.lane.b32.xlu0 %v211_v39, %s1192_s19 }
  0x26   : > { %1125 = vmatpush3.bf16.msra.mxu1 %v1181_v61 }
  0x29   : > { %258 = vrot.lane.b32.xlu0 %v251_v40, %s1191_s18  ;;  %270 = vrot.lane.b32.xlu1 %v263_v45, %s1193_s21 }
  0x87   : > { %v255_v62 = vpop.permute.xlu1 %254  ;;  %v215_v63 = vpop.permute.xlu0 %214 }
  0x88   : > { %v278_v5 = vsel %vm272_vm0, %v1232_v6, %v215_v63 }
  0x89   : > { %v289_v13 = vsel %vm285_vm1, %v278_v5, %v255_v62 }
  0x8b   : > { %v257_v0 = vpop.permute.xlu1 %256  ;;  %v217_v1 = vpop.permute.xlu0 %216 }
  0x8c   : > { %v281_v8 = vsel %vm272_vm0, %v1234_v7, %v217_v1 }
  0x8d   : > { %v291_v15 = vsel %vm285_vm1, %v281_v8, %v257_v0 }
  0x8f   : > { %v253_v2 = vpop.permute.xlu1 %252  ;;  %v213_v4 = vpop.permute.xlu0 %212 }
  0x90   : > { %v275_v11 = vsel %vm272_vm0, %v1242_v12, %v213_v4 }
  0x91   : > { %v287_v20 = vsel %vm285_vm1, %v275_v11, %v253_v2 }
  0x93   : > { %v267_v14 = vpop.permute.xlu1 %266  ;;  %v269_v16 = vpop.permute.xlu0 %268 }
  0x94   : > { %v298_v17 = vsel %vm294_vm2, %v289_v13, %v267_v14  ;;  %v300_v6 = vsel %vm294_vm2, %v291_v15, %v269_v16 }
  0x95   : > { %v311_v19 = vshll.u32 %v298_v17, 16  ;;  %v317_v7 = vshll.u32 %v300_v6, 16  ;;  %v309_v21 = vshrl.u32 %v298_v17, 16  ;;  %v315_v24 = vshrl.u32 %v300_v6, 16 }
  0x97   : > { %v313_v22 = vrot.slane %v311_v19, 1  ;;  %v319_v25 = vrot.slane %v317_v7, 1  ;;  %v265_v12 = vpop.permute.xlu1 %264  ;;  %v219_v26 = vpop.permute.xlu0 %218 }
  0x98   : > { %v296_v27 = vsel %vm294_vm2, %v287_v20, %v265_v12  ;;  %v284_v32 = vsel %vm272_vm0, %v1261_v23, %v219_v26 }
  0x99   : > { %v314_v29 = vor.u32 %v313_v22, %v309_v21  ;;  %v320_v30 = vor.u32 %v319_v25, %v315_v24  ;;  %v305_v31 = vshll.u32 %v296_v27, 16  ;;  %v303_v35 = vshrl.u32 %v296_v27, 16  ;;  %v1049_v22 = vld [vmem:[%s1421_s2] ss:$0 sm:$0xff] }
  0x9b   : > { %v332_v33 = vcombine.low %v298_v17, %v314_v29  ;;  %v363_v34 = vcombine.low %v300_v6, %v320_v30  ;;  %v307_v36 = vrot.slane %v305_v31, 1  ;;  %v259_v37 = vpop.permute.xlu0 %258  ;;  %v271_v38 = vpop.permute.xlu1 %270 }
  0x9c   : > { %v293_v39 = vsel %vm285_vm1, %v284_v32, %v259_v37 }
  0x9d   : > { %v346_v40 = vrot.slane %v332_v33, %v1369_v28  ;;  %v370_v41 = vrot.slane %v363_v34, %v1369_v28  ;;  %v308_v3 = vor.u32 %v307_v36, %v303_v35  ;;  %v302_v42 = vsel %vm294_vm2, %v293_v39, %v271_v38 }
  0x9e   : > { %v323_v43 = vshll.u32 %v302_v42, 16  ;;  %v321_v46 = vshrl.u32 %v302_v42, 16 }
  0x9f   : > { %v331_v44 = vcombine.low %v296_v27, %v308_v3  ;;  %v371_v45 = vcombine.low %v346_v40, %v370_v41  ;;  %v372_v53 = vcombine.high %v346_v40, %v370_v41 }
  0xa0   : > { %v325_v23 = vrot.slane %v323_v43, 1 }
  0xa1   : > { %v339_v47 = vrot.slane %v331_v44, %v1369_v28  ;;  %v379_v49 = vrot.slane %v371_v45, %v1369_v28  ;;  %v386_v61 = vrot.slane %v372_v53, %v1369_v28 }
  0xa2   : > { %v326_v48 = vor.u32 %v325_v23, %v321_v46 }
  0xa3   : > { %v348_v50 = vcombine.high %v339_v47, %v346_v40  ;;  %v347_v51 = vcombine.low %v339_v47, %v346_v40  ;;  %v415_v56 = vunpack.i.h.s16 %v379_v49 }
  0xa4   : > { %v387_v52 = vcombine.low %v302_v42, %v326_v48 }
  0xa5   : > { %v362_v54 = vrot.slane %v348_v50, %v1369_v28  ;;  %v355_v60 = vrot.slane %v347_v51, %v1369_v28  ;;  %v1051_v0 = vpack.i.b16 %v386_v61, %v415_v56 }
  0xa6   : > { %v394_v55 = vrot.slane %v387_v52, %v1369_v28 }
  0xa7   : > { %v1050_v57 = vpack.i.b16 %v379_v49, %v362_v54 }
  0xa8   : > { %v395_v58 = vcombine.low %v370_v41, %v394_v55  ;;  %v396_v59 = vcombine.high %v370_v41, %v394_v55 }
  0xa9   : > { %v496_v1 = vcombine.low %v355_v60, %v1050_v57 }
  0xaa   : > { %v403_v62 = vrot.slane %v395_v58, %v1369_v28  ;;  %v410_v63 = vrot.slane %v396_v59, %v1369_v28 }
  0xab   : > { %v504_v5 = vrot.slane %v496_v1, %v1369_v28 }
  0xac   : > { %v419_v2 = vunpack.i.l.s16 %v410_v63  ;;  %v497_v4 = vcombine.low %v1051_v0, %v403_v62  ;;  %v977_v0 = vld [vmem:[%s170_s13] sm:$0x3] }
  0xae   : > { %v511_v8 = vrot.slane %v497_v4, %v1369_v28  ;;  %v518_v9 = vrot.slane %v419_v2, %v1369_v28 }
  0xb0   : > { %v520_v10 = vcombine.high %v504_v5, %v511_v8  ;;  %v521_v11 = vcombine.high %v518_v9, %v518_v9  ;;  %v519_v13 = vcombine.low %v504_v5, %v511_v8  ;;  %v542_v17 = vrot.slane %v518_v9, %v1369_v28  ;;  %v980_v5 = vld [vmem:[%s170_s13 + $0x2] sm:$0x3]  ;;  %v983_v8 = vld [vmem:[%s170_s13 + $0x4] sm:$0x3] }
  0xb2   : > { %v535_v14 = vrot.slane %v520_v10, %v1369_v28  ;;  %v549_v15 = vrot.slane %v521_v11, %v1369_v28  ;;  %v528_v16 = vrot.slane %v519_v13, %v1369_v28 }
  0xb4   : > { %v552_v6 = vcombine.low %v535_v14, %v549_v15  ;;  %v553_v18 = vcombine.high %v535_v14, %v549_v15  ;;  %v550_v19 = vcombine.low %v528_v16, %v542_v17  ;;  %v551_v7 = vcombine.high %v528_v16, %v542_v17 }
  0xb6   : > { %782 = vmatprep.mubr.bf16.mxu0 %v552_v6  ;;  %823 = vmatprep.mubr.bf16.mxu1 %v553_v18 }
  0xb7   : > { %783 = vmatmul.mubr.bf16.vlgmr.msra.gmra.mrb[0].mxu0 %v550_v19  ;;  %824 = vmatmul.mubr.bf16.vlgmr.msra.gmra.mrb[0].mxu1 %v551_v7 }
 0x18a   : > { %v1104_v20 = vpop.f32.mrb[0].mxu0  ;;  %v1126_v21 = vpop.f32.mrb[0].mxu1 }
 0x18b   : > { %v1105_v24 = vpop.f32.mrb[1].mxu0  ;;  %v1127_v25 = vpop.f32.mrb[1].mxu1 }
 0x18c   : > { %v1106_v12 = vadd.f32 %v1105_v24, %v1104_v20  ;;  %v1128_v26 = vadd.f32 %v1127_v25, %v1126_v21  ;;  %v1107_v27 = vpop.f32.mrb[2].mxu0  ;;  %v1129_v29 = vpop.f32.mrb[2].mxu1 }
 0x18d   : > { %v1108_v30 = vpop.f32.mrb[3].mxu0  ;;  %v1130_v31 = vpop.f32.mrb[3].mxu1 }
 0x18e   : > { %v785_v32 = vadd.f32 %v1106_v12, %v1049_v22  ;;  %v1109_v33 = vadd.f32 %v1108_v30, %v1107_v27  ;;  %v1131_v34 = vadd.f32 %v1130_v31, %v1129_v29 }
 0x190   : > { %v826_v35 = vadd.f32 %v1128_v26, %v785_v32  ;;  %v788_v36 = vadd.f32 %v1109_v33, %v1049_v22 }
 0x192   : > { %v832_v37 = vmax.f32 %v826_v35, 0.0  ;;  %v829_v38 = vadd.f32 %v1131_v34, %v788_v36 }
 0x194   : > { %v836_v39 = vcombine.high %v832_v37, %v832_v37  ;;  %v843_v40 = vrot.slane %v832_v37, %v1369_v28  ;;  %v833_v41 = vmax.f32 %v829_v38, 0.0 }
 0x196   : > { %v850_v3 = vrot.slane %v836_v39, %v1369_v28  ;;  %v851_v42 = vcombine.high %v843_v40, %v843_v40  ;;  %v859_v43 = vrot.slane %v843_v40, %v1369_v28  ;;  %v891_v44 = vrot.slane %v833_v41, %v1369_v28 }
 0x198   : > { %v852_v45 = vcombine.high %v850_v3, %v850_v3  ;;  %v873_v46 = vrot.slane %v851_v42, %v1369_v28  ;;  %v881_v23 = vcombine.high %v859_v43, %v859_v43  ;;  %v898_v47 = vrot.slane %v891_v44, %v1369_v28 }
 0x199   : > { %v866_v48 = vrot.slane %v850_v3, %v1369_v28 }
 0x19a   : > { %v880_v49 = vrot.slane %v852_v45, %v1369_v28  ;;  %v883_v50 = vcombine.high %v873_v46, %v873_v46  ;;  %v899_v51 = vcombine.low %v859_v43, %v873_v46  ;;  %v913_v53 = vrot.slane %v881_v23, %v1369_v28 }
 0x19b   : > { %v959_v56 = vrot.slane %v898_v47, %v1369_v28 }
 0x19c   : > { %v906_v52 = vrot.slane %v899_v51, %v1369_v28  ;;  %v922_v54 = vcombine.low %v883_v50, %v866_v48  ;;  %v1084_v55 = vcombine.high %v866_v48, %v880_v49  ;;  %v936_v59 = vrot.slane %v880_v49, %v1369_v28 }
 0x19e   : > { %v914_v57 = vcombine.low %v906_v52, %v913_v53  ;;  %v929_v58 = vrot.slane %v922_v54, %v1369_v28  ;;  %v952_v60 = vrot.slane %v1084_v55, %v1369_v28 }
 0x1a0   : > { %v921_v61 = vrot.slane %v914_v57, %v1369_v28  ;;  %v937_v62 = vcombine.low %v929_v58, %v936_v59  ;;  %v960_v63 = vcombine.low %v952_v60, %v959_v56 }
 0x1a2   : > { %v944_v1 = vrot.slane %v937_v62, %v1369_v28  ;;  %v971_v2 = vpack.c.bf16 %v921_v61, %v921_v61  ;;  %v967_v4 = vrot.slane %v960_v63, %v1369_v28 }
 0x1a4   : > { %v972_v9 = vpack.c.bf16 %v944_v1, %v944_v1  ;;  %v978_v10 = vsel %vm976_vm5, %v971_v2, %v977_v0  ;;  %v973_v11 = vpack.c.bf16 %v967_v4, %v967_v4 }
 0x1a5   : > { %979 = vst [vmem:[%s170_s13] sm:$0x3] %v978_v10 }
 0x1a6   : > { %v981_v13 = vsel %vm976_vm5, %v972_v9, %v980_v5  ;;  %v984_v14 = vsel %vm976_vm5, %v973_v11, %v983_v8 }
 0x1a7   : > { %982 = vst [vmem:[%s170_s13 + $0x2] sm:$0x3] %v981_v13  ;;  %985 = vst [vmem:[%s170_s13 + $0x4] sm:$0x3] %v984_v14 }
 0x1a8 PF: > { %s13_s12 = sadd.s32 1, %s1188_s12  }
 0x1a9   : > { %p10_p4 = scmp.ge.s32.totalorder %s13_s12, 4  }
 0x1ab   :  { %12 = sbr.rel (!%p10_p4) target bundleno = 1 (0x1), region = 62 }

// kernel: distributional_dqn_forward.6
= control target key start
LH: loop header
LB: loop body
LE: loop exit
PB: predicated region body
PF: predicated region fallthrough
CT: control target
= control target key end

     0   :  { %s887_s12 = smov 0   ;;  %s1045_s0 = inlined_call_operand.vmem [shape: bf16[2,3,3,128], index: 0, kind: input, shape index: {}]   ;;  %s1046_s1 = inlined_call_operand.vmem [shape: bf16[576,64], index: 1, kind: input, shape index: {}]   ;;  %s1047_s2 = inlined_call_operand.vmem [shape: f32[1,64], index: 2, kind: input, shape index: {}]   ;;  %s1048_s3 = inlined_call_operand.vmem [shape: bf16[2,1,1,64], index: 3, kind: output, shape index: {}]  }
   0x1 LB: > { %s699_s13 = sadd.s32 4294967295, %s861_s12   ;;  %p703_p0 = scmp.ge.s32.totalorder %s861_s12, 1  ;;  %s861_s12 = sphi %s887_s12, %s13_s12  }
   0x2   : > { %p137_p1 = scmp.lt.s32.totalorder %s861_s12, 3 }
   0x4   : > { %p138_p2 = pnand %p703_p0, %p137_p1 }
   0x5   : > { %p159_p3 = scmp.lt.s32.totalorder (!%p138_p2), %s699_s13, 1  ;;  %v175_v0 = vlaneseq (!%p138_p2)  ;;  %v863_v1 = vmov (!%p138_p2), 1983009808   ;;  %v819_v3 = vld [vmem:[%s1046_s1 + $0x40] sm:$0xff] (!%p138_p2)   ;;  %v821_v6 = vld [vmem:[%s1046_s1 + $0x48] sm:$0xff] (!%p138_p2)   ;;  %s864_s30 = smov (!%p138_p2), 64  }
   0x6   : > { %141 = sbr.rel (%p138_p2) target bundleno = 374 (0x176), region = 32  ;;  %v173_v2 = vunpack.c.l.s4 (!%p138_p2), %v863_v1  ;;  %v820_v5 = vld [vmem:[%s1046_s1] sm:$0xff] (!%p138_p2)   ;;  %745 = vmatprep.subr.bf16.mxu0 (!%p138_p2), %v819_v3  ;;  %v822_v8 = vld [vmem:[%s1046_s1 + $0x8] sm:$0xff] (!%p138_p2)   ;;  %v825_v17 = vld [vmem:[%s1046_s1 + $0x50] sm:$0xff] (!%p138_p2)   ;;  %v865_v44 = vmov (!%p138_p2), 0.0   ;;  %vm215_vm0 = vcmask (!%p138_p2), 523264  }
   0x7   : > { %v176_v4 = vshrl.u32 (!%p138_p2), %v175_v0, 7  ;;  %746 = vmatpush3.bf16.msra.mxu0 (!%p138_p2), %v820_v5  ;;  %v823_v10 = vld [vmem:[%s1046_s1 + $0xc0] sm:$0xff] (!%p138_p2)   ;;  %v826_v19 = vld [vmem:[%s1046_s1 + $0x10] sm:$0xff] (!%p138_p2)   ;;  %v827_v21 = vld [vmem:[%s1046_s1 + $0xc8] sm:$0xff] (!%p138_p2)   ;;  %vm866_vm1 = vmmov (!%p138_p2), 0   ;;  %vm646_vm2 = vcmask (!%p138_p2), 516096  }
   0x8   : > { %v174_v7 = vunpack.c.0.s8 (!%p138_p2), %v173_v2  ;;  %747 = vmatprep.subr.bf16.mxu0 (!%p138_p2), %v821_v6  ;;  %v824_v11 = vld [vmem:[%s1046_s1 + $0x80] sm:$0xff] (!%p138_p2)   ;;  %767 = vmatprep.subr.bf16.mxu1 (!%p138_p2), %v823_v10  ;;  %v828_v22 = vld [vmem:[%s1046_s1 + $0x88] sm:$0xff] (!%p138_p2)   ;;  %v829_v24 = vld [vmem:[%s1046_s1 + $0x58] sm:$0xff] (!%p138_p2)   ;;  %vm647_vm3 = vsmask.f32 (!%p138_p2), 256 }
   0x9   : > { %768 = vmatpush3.bf16.msra.mxu1 (!%p138_p2), %v824_v11  ;;  %v830_v25 = vld [vmem:[%s1046_s1 + $0x18] sm:$0xff] (!%p138_p2)   ;;  %v831_v26 = vld [vmem:[%s1046_s1 + $0xd0] sm:$0xff] (!%p138_p2)   ;;  %v833_v28 = vld [vmem:[%s1046_s1 + $0x60] sm:$0xff] (!%p138_p2)  }
   0xa   : > { %v177_v9 = vsub.s32 (!%p138_p2), %v174_v7, %v176_v4  ;;  %769 = vmatprep.subr.bf16.mxu1 (!%p138_p2), %v827_v21  ;;  %v832_v27 = vld [vmem:[%s1046_s1 + $0x90] sm:$0xff] (!%p138_p2)   ;;  %v834_v29 = vld [vmem:[%s1046_s1 + $0x20] sm:$0xff] (!%p138_p2)   ;;  %v835_v30 = vld [vmem:[%s1046_s1 + $0xd8] sm:$0xff] (!%p138_p2)  }
   0xb   : > { %748 = vmatpush3.bf16.msra.mxu0 (!%p138_p2), %v822_v8  ;;  %v836_v31 = vld [vmem:[%s1046_s1 + $0x98] sm:$0xff] (!%p138_p2)   ;;  %v837_v32 = vld [vmem:[%s1046_s1 + $0x68] sm:$0xff] (!%p138_p2)   ;;  %v839_v34 = vld [vmem:[%s1046_s1 + $0xe0] sm:$0xff] (!%p138_p2)  }
   0xc   : > { %749 = vmatprep.subr.bf16.mxu0 (!%p138_p2), %v825_v17  ;;  %v838_v33 = vld [vmem:[%s1046_s1 + $0x28] sm:$0xff] (!%p138_p2)   ;;  %v840_v35 = vld [vmem:[%s1046_s1 + $0xa0] sm:$0xff] (!%p138_p2)   ;;  %v841_v36 = vld [vmem:[%s1046_s1 + $0x70] sm:$0xff] (!%p138_p2)  }
   0xd   : > { %s1050_s13 = smov (!%p159_p3, %s699_s13), 1  ;;  %770 = vmatpush3.bf16.msra.mxu1 %v828_v22  ;;  %v842_v37 = vld [vmem:[%s1046_s1 + $0x30] sm:$0xff]   ;;  %v843_v38 = vld [vmem:[%s1046_s1 + $0xe8] sm:$0xff]   ;;  %v845_v40 = vld [vmem:[%s1046_s1 + $0x78] sm:$0xff]  }
   0xe   : > { %s806_s20 = smul.u32 6, %s1050_s13  ;;  %771 = vmatprep.subr.bf16.mxu1 %v831_v26  ;;  %v844_v39 = vld [vmem:[%s1046_s1 + $0xa8] sm:$0xff]   ;;  %v846_v41 = vld [vmem:[%s1046_s1 + $0x38] sm:$0xff]   ;;  %v847_v42 = vld [vmem:[%s1046_s1 + $0xf0] sm:$0xff]  }
   0xf   : > { %750 = vmatpush3.bf16.msra.mxu0 %v826_v19  ;;  %v848_v43 = vld [vmem:[%s1046_s1 + $0xb0] sm:$0xff]   ;;  %v849_v45 = vld [vmem:[%s1046_s1 + $0xf8] sm:$0xff]   ;;  %v850_v50 = vld [vmem:[%s1046_s1 + $0x100] sm:$0xff]  }
  0x10   : > { %s163_s27 = scalar_lea.vmem %s1045_s0, %s806_s20  ;;  %751 = vmatprep.subr.bf16.mxu0 %v829_v24  ;;  %v851_v46 = vld [vmem:[%s1046_s1 + $0xb8] sm:$0xff]   ;;  %v852_v56 = vld [vmem:[%s1046_s1 + $0x108] sm:$0xff]   ;;  %v853_v59 = vld [vmem:[%s1046_s1 + $0x110] sm:$0xff]   ;;  %s166_s20 = scalar_lea.vmem %s1048_s3, %s1050_s13 }
  0x11   : > { %v919_v12 = vld.sshfl [vmem:[%s163_s27 + $0x2] sm:$0x3 pattern:$0x76325410]  ;;  %v921_v13 = vld [vmem:[%s163_s27] sm:$0x3]  ;;  %772 = vmatpush3.bf16.msra.mxu1 %v832_v27  ;;  %vm648_vm4 = vmand %vm646_vm2, %vm647_vm3 }
  0x12   : > { %193 = vrot.lane.b32.xlu0 %v919_v12, %s864_s30  ;;  %v924_v14 = vld [vmem:[%s163_s27 + $0x4] sm:$0x3]  ;;  %v927_v15 = vrot.slane %v921_v13, %v177_v9  ;;  %v198_v23 = vrot.slane %v919_v12, 1  ;;  %773 = vmatprep.subr.bf16.mxu1 %v835_v30  ;;  %v196_v54 = vshrl.u32 %v919_v12, 16  ;;  %v854_v60 = vld [vmem:[%s1046_s1 + $0x118] sm:$0xff]  }
  0x13   : > { %v930_v16 = vrot.slane %v924_v14, %v177_v9  ;;  %752 = vmatpush3.bf16.msra.mxu0 %v830_v25  ;;  %v304_v3 = vld [vmem:[%s1047_s2] sm:$0x1] }
  0x14   : > { %v180_v18 = vshrl.u32 %v927_v15, 16  ;;  %753 = vmatprep.subr.bf16.mxu0 %v833_v28  ;;  %v184_v47 = vrot.slane %v927_v15, 1  ;;  %v649_v17 = vld [vmem:[%s166_s20] sm:$0x1] }
  0x15   : > { %v210_v20 = vshrl.u32 %v930_v16, 16  ;;  %774 = vmatpush3.bf16.msra.mxu1 %v836_v31  ;;  %v214_v61 = vrot.slane %v930_v16, 1 }
  0x16   : > { %182 = vrot.lane.b32.xlu0 %v180_v18, %s864_s30  ;;  %775 = vmatprep.subr.bf16.mxu1 %v839_v34 }
  0x17   : > { %212 = vrot.lane.b32.xlu1 %v210_v20, %s864_s30  ;;  %754 = vmatpush3.bf16.msra.mxu0 %v834_v29 }
  0x18   : > { %755 = vmatprep.subr.bf16.mxu0 %v837_v32 }
  0x19   : > { %776 = vmatpush3.bf16.msra.mxu1 %v840_v35 }
  0x1a   : > { %777 = vmatprep.subr.bf16.mxu1 %v843_v38 }
  0x1b   : > { %199 = vrot.lane.b32.xlu1 %v198_v23, %s864_s30  ;;  %756 = vmatpush3.bf16.msra.mxu0 %v838_v33 }
  0x1c   : > { %757 = vmatprep.subr.bf16.mxu0 %v841_v36 }
  0x1d   : > { %778 = vmatpush3.bf16.msra.mxu1 %v844_v39 }
  0x1e   : > { %779 = vmatprep.subr.bf16.mxu1 %v847_v42 }
  0x1f   : > { %758 = vmatpush3.bf16.msra.mxu0 %v842_v37 }
  0x20   : > { %759 = vmatprep.subr.bf16.mxu0 %v845_v40 }
  0x21   : > { %780 = vmatpush3.bf16.msra.mxu1 %v848_v43 }
  0x22   : > { %781 = vmatprep.subr.bf16.mxu1 %v849_v45 }
  0x23   : > { %760 = vmatpush3.bf16.msra.mxu0 %v846_v41 }
  0x24   : > { %794 = vmatprep.subr.bf16.mxu0 %v865_v44 }
  0x25   : > { %782 = vmatpush3.bf16.msra.mxu1 %v851_v46 }
  0x84   : > { %v194_v48 = vpop.permute.xlu0 %193 }
  0x85   : > { %v222_v49 = vsel %vm215_vm0, %v184_v47, %v194_v48 }
  0x86   : > { %556 = vmatprep.mubr.bf16.mxu0 %v222_v49 }
  0x88   : > { %v183_v51 = vpop.permute.xlu0 %182 }
  0x89   : > { %v213_v52 = vpop.permute.xlu1 %212  ;;  %v218_v53 = vsel %vm215_vm0, %v921_v13, %v183_v51 }
  0x8a   : > { %557 = vmatmul.mubr.bf16.vlgmr.msra.gmra.mrb[0].mxu0 %v218_v53  ;;  %v230_v55 = vsel %vm215_vm0, %v924_v14, %v213_v52 }
  0x8b   : > { %795 = vmatpush3.bf16.msra.mxu0 %v850_v50  ;;  %596 = vmatprep.mubr.bf16.mxu1 %v230_v55 }
  0x8c   : > { %796 = vmatprep.subr.bf16.mxu0 %v865_v44  ;;  %802 = vmatprep.mubr.msk.bf16.mxu0 %vm866_vm1, %v865_v44 }
  0x8d   : > { %v200_v57 = vpop.permute.xlu1 %199 }
  0x8e   : > { %v226_v58 = vsel %vm215_vm0, %v196_v54, %v200_v57 }
  0x8f   : > { %597 = vmatmul.mubr.bf16.vlgmr.msra.gmra.mrb[0].mxu1 %v226_v58  ;;  %797 = vmatpush3.bf16.msra.mxu0 %v852_v56 }
  0x90   : > { %798 = vmatprep.subr.bf16.mxu0 %v865_v44 }
  0x93   : > { %799 = vmatpush3.bf16.msra.mxu0 %v853_v59 }
  0x94   : > { %800 = vmatprep.subr.bf16.mxu0 %v865_v44 }
  0x97   : > { %801 = vmatpush3.bf16.msra.mxu0 %v854_v60 }
  0x9a   : > { %803 = vmatmul.mubr.msk.bf16.vlgmr.msra.gmra.mrb[4].mxu0 %vm215_vm0, %v214_v61 }
 0x15d   : > { %v761_v62 = vpop.f32.mrb[0].mxu0 }
 0x15e   : > { %v762_v63 = vpop.f32.mrb[1].mxu0 }
 0x15f   : > { %v763_v0 = vadd.f32 %v762_v63, %v761_v62  ;;  %v764_v1 = vpop.f32.mrb[2].mxu0 }
 0x160   : > { %v765_v2 = vpop.f32.mrb[3].mxu0 }
 0x161   : > { %v559_v6 = vadd.f32 %v763_v0, %v304_v3 }
 0x162   : > { %v783_v4 = vpop.f32.mrb[0].mxu1 }
 0x163   : > { %v784_v5 = vpop.f32.mrb[1].mxu1 }
 0x164   : > { %v785_v7 = vadd.f32 %v784_v5, %v783_v4  ;;  %v786_v8 = vpop.f32.mrb[2].mxu1 }
 0x165   : > { %v787_v9 = vpop.f32.mrb[3].mxu1 }
 0x166   : > { %v599_v10 = vadd.f32 %v785_v7, %v559_v6 }
 0x16d   : > { %v638_v11 = vpop.f32.mrb[4].mxu0 }
 0x16e   : > { %v639_v12 = vadd.f32 %v638_v11, %v599_v10  ;;  %v804_v13 = vpop.f32.mrb[5].mxu0 }
 0x16f   : > { %v641_v14 = vpop.f32.mrb[6].mxu0 }
 0x170   : > { %v644_v15 = vmax.f32 %v639_v12, 0.0  ;;  %v805_v16 = vpop.f32.mrb[7].mxu0 }
 0x172   : > { %v645_v18 = vpack.c.bf16 %v644_v15, %v644_v15 }
 0x174   : > { %v650_v19 = vsel %vm648_vm4, %v645_v18, %v649_v17 }
 0x175   : > { %651 = vst [vmem:[%s166_s20] sm:$0x1] %v650_v19 }
 0x176 PF: > { %s13_s12 = sadd.s32 1, %s861_s12  }
 0x177   : > { %p10_p4 = scmp.ge.s32.totalorder %s13_s12, 4  }
 0x179   :  { %12 = sbr.rel (!%p10_p4) target bundleno = 1 (0x1), region = 62 }

// kernel: distributional_dqn_forward.7
= control target key start
LH: loop header
LB: loop body
LE: loop exit
PB: predicated region body
PF: predicated region fallthrough
CT: control target
= control target key end

     0   :  { %v1377_v1 = vmov 0   ;;  %vm140_vm0 = vcmask 523264   ;;  %s1788_s1 = inlined_call_operand.vmem [shape: bf16[64,512], index: 1, kind: input, shape index: {}]   ;;  %s1789_s3 = inlined_call_operand.vmem [shape: bf16[512,384], index: 3, kind: input, shape index: {}]   ;;  %s1790_s0 = inlined_call_operand.vmem [shape: bf16[8,64], index: 0, kind: input, shape index: {}]   ;;  %s1791_s2 = inlined_call_operand.vmem [shape: f32[1,512], index: 2, kind: input, shape index: {}]   ;;  %s1792_s4 = inlined_call_operand.vmem [shape: f32[1,384], index: 4, kind: input, shape index: {}]   ;;  %s1793_s5 = inlined_call_operand.vmem [shape: f32[8,384], index: 5, kind: output, shape index: {}]  }
   0x1   :  { %v1225_v0 = vld [vmem:[%s1788_s1 + $0x4] ss:$16 sps:$4 sm:$0xff]   ;;  %176 = vmatprep.mubr.bf16.mxu1 %v1377_v1  ;;  %v1227_v2 = vld [vmem:[%s1788_s1] ss:$16 sps:$4 sm:$0xff]   ;;  %v1239_v9 = vld [vmem:[%s1788_s1 + $0xc] ss:$16 sps:$4 sm:$0xff]  }
   0x2   :  { %144 = vmatprep.subr.bf16.mxu1 %v1225_v0  ;;  %v1228_v3 = vld [vmem:[%s1788_s1 + $0x24] ss:$16 sps:$4 sm:$0xff]   ;;  %v1230_v4 = vld [vmem:[%s1788_s1 + $0x20] ss:$16 sps:$4 sm:$0xff]   ;;  %v1252_v13 = vld [vmem:[%s1789_s3 + $0x1c] ss:$12 sps:$4 sm:$0xff]  }
   0x3   :  { %145 = vmatpush1.bf16.msra.mxu1 %v1227_v2  ;;  %v1231_v5 = vld [vmem:[%s1788_s1 + $0x44] ss:$16 sps:$4 sm:$0xff]   ;;  %v1233_v6 = vld [vmem:[%s1788_s1 + $0x40] ss:$16 sps:$4 sm:$0xff]   ;;  %v1237_v14 = vld [vmem:[%s1788_s1 + $0x8] ss:$16 sps:$4 sm:$0xff]  }
   0x4   :  { %146 = vmatprep.subr.bf16.mxu1 %v1228_v3  ;;  %v1234_v7 = vld [vmem:[%s1788_s1 + $0x64] ss:$16 sps:$4 sm:$0xff]   ;;  %v1236_v8 = vld [vmem:[%s1788_s1 + $0x60] ss:$16 sps:$4 sm:$0xff]   ;;  %v1242_v16 = vld [vmem:[%s1788_s1 + $0x2c] ss:$16 sps:$4 sm:$0xff]  }
   0x5   :  { %v1249_v10 = vld [vmem:[%s1789_s3 + $0x4] ss:$12 sps:$4 sm:$0xff]   ;;  %v1251_v11 = vld [vmem:[%s1789_s3] ss:$12 sps:$4 sm:$0xff]   ;;  %v1240_v18 = vld [vmem:[%s1788_s1 + $0x28] ss:$16 sps:$4 sm:$0xff]  }
   0x6   :  { %v21_v12 = vld [vmem:[%s1790_s0] sm:$0xf]  ;;  %891 = vmatprep.subr.bf16.mxu0 %v1249_v10  ;;  %v1254_v15 = vld [vmem:[%s1789_s3 + $0x18] ss:$12 sps:$4 sm:$0xff]   ;;  %v1257_v19 = vld [vmem:[%s1789_s3 + $0x30] ss:$12 sps:$4 sm:$0xff]  }
   0x7   :  { %147 = vmatpush1.bf16.msra.mxu1 %v1230_v4  ;;  %892 = vmatpush1.bf16.msra.mxu0 %v1251_v11  ;;  %v1255_v17 = vld [vmem:[%s1789_s3 + $0x34] ss:$12 sps:$4 sm:$0xff]   ;;  %v1258_v20 = vld [vmem:[%s1789_s3 + $0x4c] ss:$12 sps:$4 sm:$0xff]   ;;  %v1261_v24 = vld [vmem:[%s1789_s3 + $0x64] ss:$12 sps:$4 sm:$0xff]   ;;  %v40_v4 = vlaneseq }
   0x8   :  { %148 = vmatprep.subr.bf16.mxu1 %v1231_v5  ;;  %893 = vmatprep.subr.bf16.mxu0 %v1252_v13  ;;  %v1245_v21 = vld [vmem:[%s1788_s1 + $0x4c] ss:$16 sps:$4 sm:$0xff]   ;;  %v1260_v22 = vld [vmem:[%s1789_s3 + $0x48] ss:$12 sps:$4 sm:$0xff]   ;;  %v1266_v30 = vld [vmem:[%s1789_s3 + $0x78] ss:$12 sps:$4 sm:$0xff]  }
   0x9   :  { %v1243_v23 = vld [vmem:[%s1788_s1 + $0x48] ss:$16 sps:$4 sm:$0xff]   ;;  %v1248_v25 = vld [vmem:[%s1788_s1 + $0x6c] ss:$16 sps:$4 sm:$0xff]   ;;  %v1267_v31 = vld [vmem:[%s1789_s3 + $0x94] ss:$12 sps:$4 sm:$0xff]  }
   0xa   :  { %v1246_v26 = vld [vmem:[%s1788_s1 + $0x68] ss:$16 sps:$4 sm:$0xff]   ;;  %v1263_v27 = vld [vmem:[%s1789_s3 + $0x60] ss:$12 sps:$4 sm:$0xff]   ;;  %v1269_v34 = vld [vmem:[%s1789_s3 + $0x90] ss:$12 sps:$4 sm:$0xff]  }
   0xb   :  { %149 = vmatpush1.bf16.msra.mxu1 %v1233_v6  ;;  %894 = vmatpush1.bf16.msra.mxu0 %v1254_v15  ;;  %v1264_v28 = vld [vmem:[%s1789_s3 + $0x7c] ss:$12 sps:$4 sm:$0xff]   ;;  %v1280_v33 = vld [vmem:[%s1789_s3 + $0xe0] ss:$12 sps:$4 sm:$0xff]   ;;  %v1285_v37 = vld [vmem:[%s1789_s3 + $0xf8] ss:$12 sps:$4 sm:$0xff]  }
   0xc   :  { %150 = vmatprep.subr.bf16.mxu1 %v1234_v7  ;;  %895 = vmatprep.subr.bf16.mxu0 %v1255_v17  ;;  %v1275_v29 = vld [vmem:[%s1789_s3 + $0xc8] ss:$12 sps:$4 sm:$0xff]   ;;  %v1270_v35 = vld [vmem:[%s1789_s3 + $0xac] ss:$12 sps:$4 sm:$0xff]   ;;  %v1273_v39 = vld [vmem:[%s1789_s3 + $0xc4] ss:$12 sps:$4 sm:$0xff]  }
   0xd   :  { %v1277_v32 = vld [vmem:[%s1789_s3 + $0x8] ss:$12 sps:$4 sm:$0xff]   ;;  %v1282_v36 = vld [vmem:[%s1789_s3 + $0x20] ss:$12 sps:$4 sm:$0xff]   ;;  %v1287_v40 = vld [vmem:[%s1789_s3 + $0x38] ss:$12 sps:$4 sm:$0xff]  }
   0xe   :  { %v1272_v38 = vld [vmem:[%s1789_s3 + $0xa8] ss:$12 sps:$4 sm:$0xff]   ;;  %v1276_v41 = vld [vmem:[%s1789_s3 + $0xc0] ss:$12 sps:$4 sm:$0xff]   ;;  %v1290_v42 = vld [vmem:[%s1789_s3 + $0x110] ss:$12 sps:$4 sm:$0xff]  }
   0xf   :  { %151 = vmatpush1.bf16.msra.mxu1 %v1236_v8  ;;  %896 = vmatpush1.bf16.msra.mxu0 %v1257_v19  ;;  %v1278_v43 = vld [vmem:[%s1789_s3 + $0xdc] ss:$12 sps:$4 sm:$0xff]   ;;  %v1281_v46 = vld [vmem:[%s1789_s3 + $0xd8] ss:$12 sps:$4 sm:$0xff]   ;;  %v1283_v47 = vld [vmem:[%s1789_s3 + $0xf4] ss:$12 sps:$4 sm:$0xff]  }
  0x10   :  { %185 = vmatprep.subr.bf16.mxu1 %v1239_v9  ;;  %897 = vmatprep.subr.bf16.mxu0 %v1258_v20  ;;  %v1292_v44 = vld [vmem:[%s1789_s3 + $0x50] ss:$12 sps:$4 sm:$0xff]   ;;  %v1295_v45 = vld [vmem:[%s1789_s3 + $0x128] ss:$12 sps:$4 sm:$0xff]   ;;  %v1300_v49 = vld [vmem:[%s1789_s3 + $0x140] ss:$12 sps:$4 sm:$0xff]  }
  0x11   :  { %v1297_v48 = vld [vmem:[%s1789_s3 + $0x68] ss:$12 sps:$4 sm:$0xff]   ;;  %v1286_v50 = vld [vmem:[%s1789_s3 + $0xf0] ss:$12 sps:$4 sm:$0xff]   ;;  %v1288_v51 = vld [vmem:[%s1789_s3 + $0x10c] ss:$12 sps:$4 sm:$0xff]  }
  0x12   :  { %1076 = vmatmul.mubr.msk.bf16.vlgmr.msra.gmra.mrb[0].mxu1 %vm140_vm0, %v21_v12  ;;  %v1302_v52 = vld [vmem:[%s1789_s3 + $0x80] ss:$12 sps:$4 sm:$0xff]   ;;  %v1291_v53 = vld [vmem:[%s1789_s3 + $0x108] ss:$12 sps:$4 sm:$0xff]   ;;  %v1293_v54 = vld [vmem:[%s1789_s3 + $0x124] ss:$12 sps:$4 sm:$0xff]  }
  0x13   :  { %186 = vmatpush1.bf16.msra.mxu1 %v1237_v14  ;;  %217 = vmatprep.mubr.bf16.mxu1 %v1377_v1  ;;  %v1296_v55 = vld [vmem:[%s1789_s3 + $0x120] ss:$12 sps:$4 sm:$0xff]   ;;  %v1298_v56 = vld [vmem:[%s1789_s3 + $0x13c] ss:$12 sps:$4 sm:$0xff]   ;;  %v1301_v57 = vld [vmem:[%s1789_s3 + $0x138] ss:$12 sps:$4 sm:$0xff]  }
  0x14   :  { %187 = vmatprep.subr.bf16.mxu1 %v1242_v16  ;;  %898 = vmatpush1.bf16.msra.mxu0 %v1260_v22  ;;  %v1303_v58 = vld [vmem:[%s1789_s3 + $0x154] ss:$12 sps:$4 sm:$0xff]   ;;  %v1305_v59 = vld [vmem:[%s1789_s3 + $0x158] ss:$12 sps:$4 sm:$0xff]   ;;  %v1306_v60 = vld [vmem:[%s1789_s3 + $0x150] ss:$12 sps:$4 sm:$0xff]  }
  0x15   :  { %899 = vmatprep.subr.bf16.mxu0 %v1261_v24  ;;  %v1307_v61 = vld [vmem:[%s1789_s3 + $0x98] ss:$12 sps:$4 sm:$0xff]   ;;  %v1310_v63 = vld [vmem:[%s1789_s3 + $0x170] ss:$12 sps:$4 sm:$0xff]   ;;  %v1311_v0 = vld [vmem:[%s1789_s3 + $0x168] ss:$12 sps:$4 sm:$0xff]  }
  0x16   :  { %v1308_v62 = vld [vmem:[%s1789_s3 + $0x16c] ss:$12 sps:$4 sm:$0xff]   ;;  %v1312_v1 = vld [vmem:[%s1789_s3 + $0xb0] ss:$12 sps:$4 sm:$0xff]   ;;  %v1316_v3 = vld [vmem:[%s1789_s3 + $0x248] ss:$12 sps:$4 sm:$0xff]  }
  0x17   :  { %188 = vmatpush1.bf16.msra.mxu1 %v1240_v18  ;;  %v1315_v2 = vld [vmem:[%s1789_s3 + $0x184] ss:$12 sps:$4 sm:$0xff]   ;;  %v1611_v5 = vshrl.u32 %v40_v4, 7  ;;  %v1617_v7 = vld [vmem:[%s1791_s2] sm:$0xf] }
  0x18   :  { %189 = vmatprep.subr.bf16.mxu1 %v1245_v21  ;;  %900 = vmatpush1.bf16.msra.mxu0 %v1263_v27  ;;  %v1313_v20 = vld [vmem:[%s1789_s3 + $0x180] ss:$12 sps:$4 sm:$0xff]   ;;  %v1317_v21 = vld [vmem:[%s1789_s3 + $0x188] ss:$12 sps:$4 sm:$0xff]   ;;  %v1356_v4 = vld [vmem:[%s1789_s3 + $0x258] ss:$12 sps:$4 sm:$0xff]  }
  0x19   :  { %901 = vmatprep.subr.bf16.mxu0 %v1264_v28  ;;  %v42_v6 = vsub.s32 0, %v1611_v5  ;;  %v46_v8 = vsub.s32 1, %v1611_v5  ;;  %v1321_v24 = vld [vmem:[%s1789_s3 + $0x260] ss:$12 sps:$4 sm:$0xff]   ;;  %v54_v27 = vsub.s32 3, %v1611_v5 }
  0x1a   :  { %v1325_v28 = vld [vmem:[%s1789_s3 + $0x1b4] ss:$12 sps:$4 sm:$0xff]  }
  0x1b   :  { %190 = vmatpush1.bf16.msra.mxu1 %v1243_v23  ;;  %v43_v9 = vrot.slane %v1617_v7, %v42_v6  ;;  %v47_v10 = vrot.slane %v1617_v7, %v46_v8  ;;  %v1320_v23 = vld [vmem:[%s1789_s3 + $0x19c] ss:$12 sps:$4 sm:$0xff]  }
  0x1c   :  { %191 = vmatprep.subr.bf16.mxu1 %v1248_v25  ;;  %902 = vmatpush1.bf16.msra.mxu0 %v1266_v30  ;;  %v1318_v25 = vld [vmem:[%s1789_s3 + $0x198] ss:$12 sps:$4 sm:$0xff]   ;;  %v1323_v30 = vld [vmem:[%s1789_s3 + $0x1b0] ss:$12 sps:$4 sm:$0xff]  }
  0x1d   :  { %903 = vmatprep.subr.bf16.mxu0 %v1267_v31  ;;  %v1327_v31 = vld [vmem:[%s1789_s3 + $0x1b8] ss:$12 sps:$4 sm:$0xff]  }
  0x1f   :  { %192 = vmatpush1.bf16.msra.mxu1 %v1246_v26  ;;  %v1322_v26 = vld [vmem:[%s1789_s3 + $0x1a0] ss:$12 sps:$4 sm:$0xff]  }
  0x20   :  { %1174 = vmatprep.subr.bf16.mxu1 %v1275_v29  ;;  %904 = vmatpush1.bf16.msra.mxu0 %v1269_v34  ;;  %v1326_v29 = vld [vmem:[%s1789_s3 + $0x278] ss:$12 sps:$4 sm:$0xff]   ;;  %v1331_v34 = vld [vmem:[%s1789_s3 + $0x290] ss:$12 sps:$4 sm:$0xff]  }
  0x21   :  { %905 = vmatprep.subr.bf16.mxu0 %v1270_v35 }
  0x22   :  { %1077 = vmatmul.mubr.msk.bf16.vlgmr.msra.gmra.mrb[4].mxu1 %vm140_vm0, %v21_v12 }
  0x23   :  { %1175 = vmatpush3.bf16.msra.mxu1 %v1277_v32  ;;  %v55_v32 = vrot.slane %v1617_v7, %v54_v27 }
  0x24   :  { %1176 = vmatprep.subr.bf16.mxu1 %v1280_v33  ;;  %906 = vmatpush1.bf16.msra.mxu0 %v1272_v38  ;;  %v1330_v33 = vld [vmem:[%s1789_s3 + $0x1cc] ss:$12 sps:$4 sm:$0xff]   ;;  %v1332_v38 = vld [vmem:[%s1789_s3 + $0x1d0] ss:$12 sps:$4 sm:$0xff]  }
  0x25   :  { %907 = vmatprep.subr.bf16.mxu0 %v1273_v39 }
  0x27   :  { %1177 = vmatpush3.bf16.msra.mxu1 %v1282_v36 }
  0x28   :  { %1178 = vmatprep.subr.bf16.mxu1 %v1285_v37  ;;  %908 = vmatpush1.bf16.msra.mxu0 %v1276_v41  ;;  %v1328_v37 = vld [vmem:[%s1789_s3 + $0x1c8] ss:$12 sps:$4 sm:$0xff]   ;;  %v1335_v41 = vld [vmem:[%s1789_s3 + $0x1e4] ss:$12 sps:$4 sm:$0xff]  }
  0x29   :  { %909 = vmatprep.subr.bf16.mxu0 %v1278_v43 }
  0x2b   :  { %1179 = vmatpush3.bf16.msra.mxu1 %v1287_v40 }
  0x2c   :  { %1180 = vmatprep.subr.bf16.mxu1 %v1290_v42  ;;  %910 = vmatpush1.bf16.msra.mxu0 %v1281_v46  ;;  %v1336_v42 = vld [vmem:[%s1789_s3 + $0x2a8] ss:$12 sps:$4 sm:$0xff]   ;;  %v1333_v46 = vld [vmem:[%s1789_s3 + $0x1e0] ss:$12 sps:$4 sm:$0xff]  }
  0x2d   :  { %911 = vmatprep.subr.bf16.mxu0 %v1283_v47  ;;  %v1337_v47 = vld [vmem:[%s1789_s3 + $0x1e8] ss:$12 sps:$4 sm:$0xff]  }
  0x2f   :  { %1181 = vmatpush3.bf16.msra.mxu1 %v1292_v44 }
  0x30   :  { %1182 = vmatprep.subr.bf16.mxu1 %v1295_v45  ;;  %912 = vmatpush1.bf16.msra.mxu0 %v1286_v50  ;;  %v50_v45 = vsub.s32 2, %v1611_v5  ;;  %v1341_v50 = vld [vmem:[%s1789_s3 + $0x2c0] ss:$12 sps:$4 sm:$0xff]  }
  0x31   :  { %913 = vmatprep.subr.bf16.mxu0 %v1288_v51 }
  0x32   :  { %v51_v51 = vrot.slane %v1617_v7, %v50_v45  ;;  %v1361_v7 = vld [vmem:[%s1789_s3 + $0x274] ss:$12 sps:$4 sm:$0xff]  }
  0x33   :  { %1183 = vmatpush3.bf16.msra.mxu1 %v1297_v48 }
  0x34   :  { %1184 = vmatprep.subr.bf16.mxu1 %v1300_v49  ;;  %914 = vmatpush1.bf16.msra.mxu0 %v1291_v53  ;;  %v1340_v49 = vld [vmem:[%s1789_s3 + $0x1fc] ss:$12 sps:$4 sm:$0xff]   ;;  %v1342_v53 = vld [vmem:[%s1789_s3 + $0x200] ss:$12 sps:$4 sm:$0xff]  }
  0x35   :  { %915 = vmatprep.subr.bf16.mxu0 %v1293_v54  ;;  %v1345_v54 = vld [vmem:[%s1789_s3 + $0x214] ss:$12 sps:$4 sm:$0xff]  }
  0x37   :  { %1185 = vmatpush3.bf16.msra.mxu1 %v1302_v52  ;;  %v1338_v52 = vld [vmem:[%s1789_s3 + $0x1f8] ss:$12 sps:$4 sm:$0xff]  }
  0x38   :  { %916 = vmatpush1.bf16.msra.mxu0 %v1296_v55  ;;  %1186 = vmatprep.subr.bf16.mxu1 %v1305_v59  ;;  %v1346_v55 = vld [vmem:[%s1789_s3 + $0x2d8] ss:$12 sps:$4 sm:$0xff]  }
  0x39   :  { %917 = vmatprep.subr.bf16.mxu0 %v1298_v56  ;;  %v1350_v59 = vld [vmem:[%s1789_s3 + $0x22c] ss:$12 sps:$4 sm:$0xff]  }
  0x3b   :  { %1187 = vmatpush3.bf16.msra.mxu1 %v1307_v61 }
  0x3c   :  { %918 = vmatpush1.bf16.msra.mxu0 %v1301_v57  ;;  %1188 = vmatprep.subr.bf16.mxu1 %v1310_v63  ;;  %v1343_v57 = vld [vmem:[%s1789_s3 + $0x210] ss:$12 sps:$4 sm:$0xff]  }
  0x3d   :  { %919 = vmatprep.subr.bf16.mxu0 %v1303_v58  ;;  %v1347_v58 = vld [vmem:[%s1789_s3 + $0x218] ss:$12 sps:$4 sm:$0xff]   ;;  %v1352_v63 = vld [vmem:[%s1789_s3 + $0x230] ss:$12 sps:$4 sm:$0xff]  }
  0x3f   :  { %1189 = vmatpush3.bf16.msra.mxu1 %v1312_v1 }
  0x40   :  { %920 = vmatpush1.bf16.msra.mxu0 %v1306_v60  ;;  %1196 = vmatprep.subr.bf16.mxu1 %v1316_v3  ;;  %v1351_v60 = vld [vmem:[%s1789_s3 + $0x2f0] ss:$12 sps:$4 sm:$0xff]  }
  0x41   :  { %921 = vmatprep.subr.bf16.mxu0 %v1308_v62  ;;  %v1348_v62 = vld [vmem:[%s1789_s3 + $0x228] ss:$12 sps:$4 sm:$0xff]  }
  0x42   :  { %v1358_v3 = vld [vmem:[%s1789_s3 + $0x25c] ss:$12 sps:$4 sm:$0xff]  }
  0x44   :  { %922 = vmatpush1.bf16.msra.mxu0 %v1311_v0  ;;  %v1355_v0 = vld [vmem:[%s1789_s3 + $0x244] ss:$12 sps:$4 sm:$0xff]  }
  0x45   :  { %932 = vmatprep.subr.bf16.mxu0 %v1315_v2  ;;  %v1353_v2 = vld [vmem:[%s1789_s3 + $0x240] ss:$12 sps:$4 sm:$0xff]  }
  0xe5   :  { %v178_v11 = vpop.f32.mrb[0].mxu1 }
  0xe6   :  { %v179_v12 = vadd.f32 %v178_v11, %v43_v9  ;;  %v180_v13 = vpop.f32.mrb[1].mxu1  ;;  %v1359_v9 = vld [vmem:[%s1789_s3 + $0x270] ss:$12 sps:$4 sm:$0xff]   ;;  %v1362_v11 = vld [vmem:[%s1789_s3 + $0x288] ss:$12 sps:$4 sm:$0xff]  }
  0xe7   :  { %v181_v14 = vadd.f32 %v180_v13, %v47_v10  ;;  %v182_v15 = vpop.f32.mrb[2].mxu1  ;;  %v1364_v10 = vld [vmem:[%s1789_s3 + $0x28c] ss:$12 sps:$4 sm:$0xff]  }
  0xe8   :  { %v226_v16 = vmax.f32 %v179_v12, 0.0  ;;  %v183_v17 = vpop.f32.mrb[3].mxu1  ;;  %v1367_v12 = vld [vmem:[%s1789_s3 + $0x2a4] ss:$12 sps:$4 sm:$0xff]   ;;  %v1365_v13 = vld [vmem:[%s1789_s3 + $0x2a0] ss:$12 sps:$4 sm:$0xff]  }
  0xe9   :  { %v227_v18 = vmax.f32 %v181_v14, 0.0  ;;  %v1370_v14 = vld [vmem:[%s1789_s3 + $0x2bc] ss:$12 sps:$4 sm:$0xff]   ;;  %v1368_v15 = vld [vmem:[%s1789_s3 + $0x2b8] ss:$12 sps:$4 sm:$0xff]  }
  0xea   :  { %v230_v22 = vpack.c.bf16 %v226_v16, %v226_v16  ;;  %v1373_v16 = vld [vmem:[%s1789_s3 + $0x2d4] ss:$12 sps:$4 sm:$0xff]   ;;  %v1371_v17 = vld [vmem:[%s1789_s3 + $0x2d0] ss:$12 sps:$4 sm:$0xff]  }
  0xeb   :  { %v231_v19 = vpack.c.bf16 %v227_v18, %v227_v18  ;;  %v1376_v18 = vld [vmem:[%s1789_s3 + $0x2ec] ss:$12 sps:$4 sm:$0xff]  }
  0xed   :  { %923 = vmatprep.mubr.bf16.mxu0 %v231_v19  ;;  %1005 = vmatprep.mubr.bf16.mxu1 %v231_v19  ;;  %v1374_v19 = vld [vmem:[%s1789_s3 + $0x2e8] ss:$12 sps:$4 sm:$0xff]  }
  0xee   :  { %924 = vmatmul.mubr.bf16.vlgmr.msra.gmra.mrb[0].mxu0 %v230_v22  ;;  %1006 = vmatmul.mubr.bf16.vlgmr.msra.gmra.mrb[8].mxu1 %v230_v22 }
  0xef   :  { %933 = vmatpush1.bf16.msra.mxu0 %v1313_v20  ;;  %1197 = vmatpush3.bf16.msra.mxu1 %v1317_v21 }
  0xf0   :  { %934 = vmatprep.subr.bf16.mxu0 %v1320_v23  ;;  %1198 = vmatprep.subr.bf16.mxu1 %v1321_v24 }
  0xf3   :  { %935 = vmatpush1.bf16.msra.mxu0 %v1318_v25  ;;  %1199 = vmatpush3.bf16.msra.mxu1 %v1322_v26  ;;  %v362_v25 = vld [vmem:[%s1792_s4] sm:$0x7] }
  0xf4   :  { %936 = vmatprep.subr.bf16.mxu0 %v1325_v28  ;;  %1200 = vmatprep.subr.bf16.mxu1 %v1326_v29  ;;  %v375_v26 = vrot.slane %v362_v25, %v50_v45 }
  0xf5   :  { %v219_v35 = vpop.f32.mrb[4].mxu1 }
  0xf6   :  { %v221_v36 = vpop.f32.mrb[5].mxu1  ;;  %v220_v56 = vadd.f32 %v219_v35, %v51_v51  ;;  %v371_v35 = vrot.slane %v362_v25, %v46_v8 }
  0xf7   :  { %937 = vmatpush1.bf16.msra.mxu0 %v1323_v30  ;;  %1201 = vmatpush3.bf16.msra.mxu1 %v1327_v31  ;;  %v222_v39 = vadd.f32 %v221_v36, %v55_v32  ;;  %v223_v40 = vpop.f32.mrb[6].mxu1 }
  0xf8   :  { %938 = vmatprep.subr.bf16.mxu0 %v1330_v33  ;;  %1202 = vmatprep.subr.bf16.mxu1 %v1331_v34  ;;  %v224_v43 = vpop.f32.mrb[7].mxu1  ;;  %v228_v61 = vmax.f32 %v220_v56, 0.0  ;;  %v367_v34 = vrot.slane %v362_v25, %v42_v6 }
  0xf9   :  { %v229_v44 = vmax.f32 %v222_v39, 0.0 }
  0xfa   :  { %v232_v1 = vpack.c.bf16 %v228_v61, %v228_v61 }
  0xfb   :  { %939 = vmatpush1.bf16.msra.mxu0 %v1328_v37  ;;  %1203 = vmatpush3.bf16.msra.mxu1 %v1332_v38  ;;  %v233_v48 = vpack.c.bf16 %v229_v44, %v229_v44 }
  0xfc   :  { %940 = vmatprep.subr.bf16.mxu0 %v1335_v41  ;;  %1204 = vmatprep.subr.bf16.mxu1 %v1336_v42 }
  0xfd   :  { %1045 = vmatprep.mubr.bf16.mxu1 %v233_v48  ;;  %964 = vmatprep.mubr.bf16.mxu0 %v233_v48 }
  0xff   :  { %941 = vmatpush1.bf16.msra.mxu0 %v1333_v46  ;;  %1205 = vmatpush3.bf16.msra.mxu1 %v1337_v47 }
 0x100   :  { %942 = vmatprep.subr.bf16.mxu0 %v1340_v49  ;;  %1206 = vmatprep.subr.bf16.mxu1 %v1341_v50 }
 0x103   :  { %943 = vmatpush1.bf16.msra.mxu0 %v1338_v52  ;;  %1207 = vmatpush3.bf16.msra.mxu1 %v1342_v53 }
 0x104   :  { %944 = vmatprep.subr.bf16.mxu0 %v1345_v54  ;;  %1208 = vmatprep.subr.bf16.mxu1 %v1346_v55 }
 0x107   :  { %945 = vmatpush1.bf16.msra.mxu0 %v1343_v57  ;;  %1209 = vmatpush3.bf16.msra.mxu1 %v1347_v58 }
 0x108   :  { %946 = vmatprep.subr.bf16.mxu0 %v1350_v59  ;;  %1210 = vmatprep.subr.bf16.mxu1 %v1351_v60 }
 0x10b   :  { %947 = vmatpush1.bf16.msra.mxu0 %v1348_v62  ;;  %1211 = vmatpush3.bf16.msra.mxu1 %v1352_v63 }
 0x10c   :  { %948 = vmatprep.subr.bf16.mxu0 %v1355_v0 }
 0x10e   :  { %1046 = vmatmul.mubr.bf16.vlgmr.msra.gmra.mrb[12].mxu1 %v232_v1 }
 0x10f   :  { %949 = vmatpush1.bf16.msra.mxu0 %v1353_v2 }
 0x110   :  { %950 = vmatprep.subr.bf16.mxu0 %v1358_v3 }
 0x113   :  { %951 = vmatpush1.bf16.msra.mxu0 %v1356_v4 }
 0x114   :  { %952 = vmatprep.subr.bf16.mxu0 %v1361_v7 }
 0x117   :  { %953 = vmatpush1.bf16.msra.mxu0 %v1359_v9 }
 0x118   :  { %954 = vmatprep.subr.bf16.mxu0 %v1364_v10 }
 0x11b   :  { %955 = vmatpush1.bf16.msra.mxu0 %v1362_v11 }
 0x11c   :  { %956 = vmatprep.subr.bf16.mxu0 %v1367_v12 }
 0x11f   :  { %957 = vmatpush1.bf16.msra.mxu0 %v1365_v13 }
 0x120   :  { %958 = vmatprep.subr.bf16.mxu0 %v1370_v14 }
 0x123   :  { %959 = vmatpush1.bf16.msra.mxu0 %v1368_v15 }
 0x124   :  { %960 = vmatprep.subr.bf16.mxu0 %v1373_v16 }
 0x127   :  { %961 = vmatpush1.bf16.msra.mxu0 %v1371_v17 }
 0x128   :  { %962 = vmatprep.subr.bf16.mxu0 %v1376_v18 }
 0x12b   :  { %963 = vmatpush1.bf16.msra.mxu0 %v1374_v19 }
 0x12e   :  { %965 = vmatmul.mubr.bf16.vlgmr.msra.gmra.mrb[0].mxu0 %v232_v1 }
 0x1c1   :  { %v1190_v20 = vpop.f32.mrb[8].mxu1 }
 0x1c2   :  { %v1191_v21 = vpop.f32.mrb[9].mxu1 }
 0x1c3   :  { %v1192_v22 = vadd.f32 %v1191_v21, %v1190_v20  ;;  %v1193_v23 = vpop.f32.mrb[10].mxu1 }
 0x1c4   :  { %v1194_v24 = vpop.f32.mrb[11].mxu1 }
 0x1c5   :  { %v1008_v29 = vadd.f32 %v1192_v22, %v375_v26 }
 0x1e1   :  { %v1212_v27 = vpop.f32.mrb[12].mxu1 }
 0x1e2   :  { %v1213_v28 = vpop.f32.mrb[13].mxu1 }
 0x1e3   :  { %v1214_v30 = vadd.f32 %v1213_v28, %v1212_v27  ;;  %v1215_v31 = vpop.f32.mrb[14].mxu1 }
 0x1e4   :  { %v1216_v32 = vpop.f32.mrb[15].mxu1 }
 0x1e5   :  { %v1048_v33 = vadd.f32 %v1214_v30, %v1008_v29 }
 0x1e7   :  { %1055 = vst [vmem:[%s1793_s5 + $0x10] sm:$0xff] %v1048_v33 }
 0x201   :  { %v966_v36 = vpop.f32.mrb[0].mxu0 }
 0x202   :  { %v1218_v37 = vadd.f32 %v966_v36, %v367_v34  ;;  %v968_v38 = vpop.f32.mrb[1].mxu0 }
 0x203   :  { %v1219_v39 = vadd.f32 %v968_v38, %v371_v35  ;;  %v970_v40 = vpop.f32.mrb[2].mxu0 }
 0x204   :  { %1053 = vst [vmem:[%s1793_s5] sm:$0xff] %v1218_v37  ;;  %v971_v41 = vpop.f32.mrb[3].mxu0 }
 0x205   :  { %1054 = vst [vmem:[%s1793_s5 + $0x8] sm:$0xff] %v1219_v39 }

</bundles_post_ra>
